<compile_context>
chip_gen: v7x
topology: tpu7x:2x2x1
jax: 0.10.0
libtpu: 0.0.40
codegen_flags: <defaults>
</compile_context>

<pallas_src>
import jax
import jax.numpy as jnp
from jax.experimental import pallas as pl
from jax.experimental.pallas import tpu as pltpu

# --- small, module-consistent sizes for the demo -------------------------------------
INPUT_SIZE = 16
HIDDEN_SIZE = 32          # hidden_size == output_size in TransformerMemory
BLOCK_COUNT = 2
CONTEXT_LENGTH = 8
HEAD_COUNT = 4
HEAD_DIM = HIDDEN_SIZE // HEAD_COUNT
MLP_HIDDEN = 4 * HIDDEN_SIZE
LN_EPS = 1e-5
ATTN_SCALE = 1.0 / float(HEAD_DIM) ** 0.5

N_PARAMS_PER_BLOCK = 12
N_PARAMS = 3 + N_PARAMS_PER_BLOCK * BLOCK_COUNT + 4


# =============================== fused forward kernel =================================

def _ln(x, g, b):
    mean = jnp.mean(x, axis=-1, keepdims=True)
    var = jnp.mean(jnp.square(x - mean), axis=-1, keepdims=True)
    return (x - mean) * jax.lax.rsqrt(var + LN_EPS) * g + b


def _gelu(x):
    # tanh-approx GELU (EUP-friendly). nn.GELU default is exact erf (~1e-3 rel difference).
    # TODO(synk): exact-erf GELU if bit-parity with nn.GELU is required.
    return 0.5 * x * (1.0 + jnp.tanh(0.7978845608028654 * (x + 0.044715 * x * x * x)))


def _fused_forward_kernel(*refs):
    """One grid step == one batch element's entire forward pass; everything VMEM-resident."""
    x_ref, ctx_ref = refs[0], refs[1]
    param_refs = refs[2:2 + N_PARAMS]
    out_ref, newctx_ref = refs[-2], refs[-1]

    S = CONTEXT_LENGTH
    T = x_ref.shape[1]

    it = iter(param_refs)
    nxt = lambda: next(it)[...].astype(jnp.float32)

    x = x_ref[0].astype(jnp.float32)          # (T, input_size)
    ctx = ctx_ref[0].astype(jnp.float32)      # (S, hidden)

    # --- token embedding + rolling context window (in-kernel, no HBM concat pass) ---
    w_emb, b_emb, pos = nxt(), nxt(), nxt()
    tok = jnp.dot(x, w_emb, preferred_element_type=jnp.float32) + b_emb   # (T, H)
    if T >= S:
        window = tok[T - S:]
    else:
        window = jnp.concatenate([ctx[T:], tok], axis=0)                  # (S, H)
    newctx_ref[0] = window.astype(newctx_ref.dtype)

    h = window + pos                                                      # (S, H)

    # causal mask, hoisted once (shared by all blocks / heads)
    row = jax.lax.broadcasted_iota(jnp.int32, (S, S), 0)
    col = jax.lax.broadcasted_iota(jnp.int32, (S, S), 1)
    causal = col <= row

    for _ in range(BLOCK_COUNT):
        ln1_g, ln1_b = nxt(), nxt()
        w_qkv, b_qkv = nxt(), nxt()
        w_o, b_o = nxt(), nxt()
        ln2_g, ln2_b = nxt(), nxt()
        w1, b1 = nxt(), nxt()
        w2, b2 = nxt(), nxt()

        # --- causal multi-head self-attention (pre-LN); all heads inside this step ---
        hn = _ln(h, ln1_g, ln1_b)
        qkv = jnp.dot(hn, w_qkv, preferred_element_type=jnp.float32) + b_qkv   # (S, 3H)

        attn_acc = jnp.zeros((S, HIDDEN_SIZE), jnp.float32)
        for hd in range(HEAD_COUNT):
            lo = hd * HEAD_DIM
            q = qkv[:, lo:lo + HEAD_DIM]
            k = qkv[:, HIDDEN_SIZE + lo:HIDDEN_SIZE + lo + HEAD_DIM]
            v = qkv[:, 2 * HIDDEN_SIZE + lo:2 * HIDDEN_SIZE + lo + HEAD_DIM]
            s = jnp.dot(q, k.T, preferred_element_type=jnp.float32) * ATTN_SCALE
            s = jnp.where(causal, s, jnp.float32(-1e30))
            m = jnp.max(s, axis=-1, keepdims=True)
            p = jnp.exp(s - m)
            p = p * pl.reciprocal(jnp.sum(p, axis=-1, keepdims=True), approx=True)
            o_h = jnp.dot(p, v, preferred_element_type=jnp.float32)            # (S, Dh)
            # fold this head's slice of the output projection in directly (no lane-concat)
            attn_acc = attn_acc + jnp.dot(o_h, w_o[lo:lo + HEAD_DIM, :],
                                          preferred_element_type=jnp.float32)
        h = h + attn_acc + b_o

        # --- MLP (pre-LN) ---
        hn = _ln(h, ln2_g, ln2_b)
        m1 = _gelu(jnp.dot(hn, w1, preferred_element_type=jnp.float32) + b1)
        h = h + jnp.dot(m1, w2, preferred_element_type=jnp.float32) + b2

    lnf_g, lnf_b = nxt(), nxt()
    w_head, b_head = nxt(), nxt()
    hn = _ln(h, lnf_g, lnf_b)
    out_all = jnp.dot(hn, w_head, preferred_element_type=jnp.float32) + b_head  # (S, H)
    out_ref[0] = out_all[S - T:].astype(out_ref.dtype)                          # last T rows


# ================================ params & wrapper ====================================

def init_params(key):
    def dense(k, din, dout, scale=0.02):
        return (jax.random.normal(k, (din, dout), jnp.float32) * scale,
                jnp.zeros((1, dout), jnp.float32))

    keys = jax.random.split(key, 4 + BLOCK_COUNT)
    params = {
        "embed": dense(keys[0], INPUT_SIZE, HIDDEN_SIZE),
        "pos": jax.random.normal(keys[1], (CONTEXT_LENGTH, HIDDEN_SIZE), jnp.float32) * 0.02,
        "lnf_g": jnp.ones((1, HIDDEN_SIZE), jnp.float32),
        "lnf_b": jnp.zeros((1, HIDDEN_SIZE), jnp.float32),
        "head": dense(keys[2], HIDDEN_SIZE, HIDDEN_SIZE),
        "blocks": [],
    }
    for i in range(BLOCK_COUNT):
        k0, k1, k2, k3 = jax.random.split(keys[3 + i], 4)
        w_qkv, b_qkv = dense(k0, HIDDEN_SIZE, 3 * HIDDEN_SIZE)
        w_o, b_o = dense(k1, HIDDEN_SIZE, HIDDEN_SIZE)
        w1, b1 = dense(k2, HIDDEN_SIZE, MLP_HIDDEN)
        w2, b2 = dense(k3, MLP_HIDDEN, HIDDEN_SIZE)
        params["blocks"].append({
            "ln1_g": jnp.ones((1, HIDDEN_SIZE), jnp.float32),
            "ln1_b": jnp.zeros((1, HIDDEN_SIZE), jnp.float32),
            "ln2_g": jnp.ones((1, HIDDEN_SIZE), jnp.float32),
            "ln2_b": jnp.zeros((1, HIDDEN_SIZE), jnp.float32),
            "w_qkv": w_qkv, "b_qkv": b_qkv, "w_o": w_o, "b_o": b_o,
            "w1": w1, "b1": b1, "w2": w2, "b2": b2,
        })
    return params


def _flatten_params(params):
    flat = [params["embed"][0], params["embed"][1], params["pos"]]
    for blk in params["blocks"]:
        flat += [blk["ln1_g"], blk["ln1_b"], blk["w_qkv"], blk["b_qkv"],
                 blk["w_o"], blk["b_o"], blk["ln2_g"], blk["ln2_b"],
                 blk["w1"], blk["b1"], blk["w2"], blk["b2"]]
    flat += [params["lnf_g"], params["lnf_b"], params["head"][0], params["head"][1]]
    assert len(flat) == N_PARAMS
    return flat


@jax.jit
def transformer_forward(params, x, context):
    """x: (T, B, input_size); context: (C, B, hidden) -> (out (T,B,H), (new_context,))."""
    T, B, _ = x.shape
    assert T <= CONTEXT_LENGTH, "trajectory chunks longer than context_length not supported"

    xb = jnp.transpose(x, (1, 0, 2))            # (B, T, in)  batch-major for the grid
    ctxb = jnp.transpose(context, (1, 0, 2))    # (B, C, H)
    flat = _flatten_params(params)

    def _rep(shape):   # full-array block, same for every grid step (no re-DMA)
        zeros = (0,) * len(shape)
        return pl.BlockSpec(shape, lambda b, _z=zeros: _z)

    in_specs = (
        [pl.BlockSpec((1, T, INPUT_SIZE), lambda b: (b, 0, 0)),
         pl.BlockSpec((1, CONTEXT_LENGTH, HIDDEN_SIZE), lambda b: (b, 0, 0))]
        + [_rep(p.shape) for p in flat]
    )
    out_specs = [pl.BlockSpec((1, T, HIDDEN_SIZE), lambda b: (b, 0, 0)),
                 pl.BlockSpec((1, CONTEXT_LENGTH, HIDDEN_SIZE), lambda b: (b, 0, 0))]
    out_shape = [jax.ShapeDtypeStruct((B, T, HIDDEN_SIZE), jnp.float32),
                 jax.ShapeDtypeStruct((B, CONTEXT_LENGTH, HIDDEN_SIZE), jnp.float32)]

    out_b, newctx_b = pl.pallas_call(
        _fused_forward_kernel,
        grid=(B,),
        in_specs=in_specs,
        out_specs=out_specs,
        out_shape=out_shape,
        compiler_params=pltpu.CompilerParams(
            dimension_semantics=("parallel",),   # batch axis shards across TCs on v7x
        ),
    )(xb, ctxb, *flat)

    out = jnp.transpose(out_b, (1, 0, 2))              # (T, B, H)
    new_context = jnp.transpose(newctx_b, (1, 0, 2))   # (C, B, H)
    return out, (new_context,)


# ============================ TransformerMemory wrapper ===============================

class TransformerMemory:
    def __init__(self, params):
        self.params = params
        self.hidden_states = None

    def _forward(self, x, hidden_states):
        T, B, _ = x.shape
        if hidden_states is None:
            context = jnp.zeros((CONTEXT_LENGTH, B, HIDDEN_SIZE), jnp.float32)
        else:
            (context,) = hidden_states
        return transformer_forward(self.params, x, context)

    def __call__(self, inp, masks=None, hidden_states=None):
        batch_mode = masks is not None
        if batch_mode:
            if hidden_states is None:
                raise ValueError("Hidden states not passed to memory module during policy update")
            out, _ = self._forward(inp, hidden_states)
            # TODO(synk): unpad_trajectories produces data-dependent (ragged) output shapes;
            # not translatable to a static-shape Pallas/JAX path.
            return out
        out, self.hidden_states = self._forward(inp[None, ...], self.hidden_states)
        return out

    def reset(self, dones=None):
        if self.hidden_states is None or dones is None:
            return
        keep = (1.0 - dones.astype(jnp.float32))[None, :, None]   # zero env rows that are done
        self.hidden_states = tuple(h * keep for h in self.hidden_states)


# ======================================= demo =========================================

if __name__ == "__main__":
    key = jax.random.PRNGKey(0)
    pkey, xkey = jax.random.split(key)
    params = init_params(pkey)

    B = 2
    x = jax.random.normal(xkey, (B, INPUT_SIZE), jnp.float32)     # inference-mode input

    mem = TransformerMemory(params)
    out = jax.block_until_ready(mem(x))        # (1, B, hidden_size), hidden state updated
    assert out.shape == (1, B, HIDDEN_SIZE)

    # second step to exercise the recurrent context window + reset
    out2 = jax.block_until_ready(mem(x))
    mem.reset(dones=jnp.array([1, 0], jnp.int32))
    assert out2.shape == (1, B, HIDDEN_SIZE)

    print("KERNEL_OK")
</pallas_src>

<mosaic_0001>
module attributes {stable_mosaic.version = 11 : i64} {
  func.func @_fused_forward_kernel(%arg0: i32, %arg1: memref<1x1x16xf32, #tpu.memory_space<vmem>>, %arg2: memref<1x8x32xf32, #tpu.memory_space<vmem>>, %arg3: memref<16x32xf32, #tpu.memory_space<vmem>>, %arg4: memref<1x32xf32, #tpu.memory_space<vmem>>, %arg5: memref<8x32xf32, #tpu.memory_space<vmem>>, %arg6: memref<1x32xf32, #tpu.memory_space<vmem>>, %arg7: memref<1x32xf32, #tpu.memory_space<vmem>>, %arg8: memref<32x96xf32, #tpu.memory_space<vmem>>, %arg9: memref<1x96xf32, #tpu.memory_space<vmem>>, %arg10: memref<32x32xf32, #tpu.memory_space<vmem>>, %arg11: memref<1x32xf32, #tpu.memory_space<vmem>>, %arg12: memref<1x32xf32, #tpu.memory_space<vmem>>, %arg13: memref<1x32xf32, #tpu.memory_space<vmem>>, %arg14: memref<32x128xf32, #tpu.memory_space<vmem>>, %arg15: memref<1x128xf32, #tpu.memory_space<vmem>>, %arg16: memref<128x32xf32, #tpu.memory_space<vmem>>, %arg17: memref<1x32xf32, #tpu.memory_space<vmem>>, %arg18: memref<1x32xf32, #tpu.memory_space<vmem>>, %arg19: memref<1x32xf32, #tpu.memory_space<vmem>>, %arg20: memref<32x96xf32, #tpu.memory_space<vmem>>, %arg21: memref<1x96xf32, #tpu.memory_space<vmem>>, %arg22: memref<32x32xf32, #tpu.memory_space<vmem>>, %arg23: memref<1x32xf32, #tpu.memory_space<vmem>>, %arg24: memref<1x32xf32, #tpu.memory_space<vmem>>, %arg25: memref<1x32xf32, #tpu.memory_space<vmem>>, %arg26: memref<32x128xf32, #tpu.memory_space<vmem>>, %arg27: memref<1x128xf32, #tpu.memory_space<vmem>>, %arg28: memref<128x32xf32, #tpu.memory_space<vmem>>, %arg29: memref<1x32xf32, #tpu.memory_space<vmem>>, %arg30: memref<1x32xf32, #tpu.memory_space<vmem>>, %arg31: memref<1x32xf32, #tpu.memory_space<vmem>>, %arg32: memref<32x32xf32, #tpu.memory_space<vmem>>, %arg33: memref<1x32xf32, #tpu.memory_space<vmem>>, %arg34: memref<1x1x32xf32, #tpu.memory_space<vmem>>, %arg35: memref<1x8x32xf32, #tpu.memory_space<vmem>>) attributes {dimension_semantics = [#tpu.dimension_semantics<parallel>], iteration_bounds = array<i64: 2>, scalar_prefetch = 0 : i64, scratch_operands = 0 : i64, tpu.core_type = #tpu.core_type<tc>, window_params = [{transform_indices = @transform_0, window_bounds = array<i64: 1, 1, 16>}, {transform_indices = @transform_1, window_bounds = array<i64: 1, 8, 32>}, {pipeline_mode = #tpu.pipeline_mode<synchronous>, transform_indices = @transform_2, window_bounds = array<i64: 16, 32>}, {pipeline_mode = #tpu.pipeline_mode<synchronous>, transform_indices = @transform_3, window_bounds = array<i64: 1, 32>}, {pipeline_mode = #tpu.pipeline_mode<synchronous>, transform_indices = @transform_4, window_bounds = array<i64: 8, 32>}, {pipeline_mode = #tpu.pipeline_mode<synchronous>, transform_indices = @transform_5, window_bounds = array<i64: 1, 32>}, {pipeline_mode = #tpu.pipeline_mode<synchronous>, transform_indices = @transform_6, window_bounds = array<i64: 1, 32>}, {pipeline_mode = #tpu.pipeline_mode<synchronous>, transform_indices = @transform_7, window_bounds = array<i64: 32, 96>}, {pipeline_mode = #tpu.pipeline_mode<synchronous>, transform_indices = @transform_8, window_bounds = array<i64: 1, 96>}, {pipeline_mode = #tpu.pipeline_mode<synchronous>, transform_indices = @transform_9, window_bounds = array<i64: 32, 32>}, {pipeline_mode = #tpu.pipeline_mode<synchronous>, transform_indices = @transform_10, window_bounds = array<i64: 1, 32>}, {pipeline_mode = #tpu.pipeline_mode<synchronous>, transform_indices = @transform_11, window_bounds = array<i64: 1, 32>}, {pipeline_mode = #tpu.pipeline_mode<synchronous>, transform_indices = @transform_12, window_bounds = array<i64: 1, 32>}, {pipeline_mode = #tpu.pipeline_mode<synchronous>, transform_indices = @transform_13, window_bounds = array<i64: 32, 128>}, {pipeline_mode = #tpu.pipeline_mode<synchronous>, transform_indices = @transform_14, window_bounds = array<i64: 1, 128>}, {pipeline_mode = #tpu.pipeline_mode<synchronous>, transform_indices = @transform_15, window_bounds = array<i64: 128, 32>}, {pipeline_mode = #tpu.pipeline_mode<synchronous>, transform_indices = @transform_16, window_bounds = array<i64: 1, 32>}, {pipeline_mode = #tpu.pipeline_mode<synchronous>, transform_indices = @transform_17, window_bounds = array<i64: 1, 32>}, {pipeline_mode = #tpu.pipeline_mode<synchronous>, transform_indices = @transform_18, window_bounds = array<i64: 1, 32>}, {pipeline_mode = #tpu.pipeline_mode<synchronous>, transform_indices = @transform_19, window_bounds = array<i64: 32, 96>}, {pipeline_mode = #tpu.pipeline_mode<synchronous>, transform_indices = @transform_20, window_bounds = array<i64: 1, 96>}, {pipeline_mode = #tpu.pipeline_mode<synchronous>, transform_indices = @transform_21, window_bounds = array<i64: 32, 32>}, {pipeline_mode = #tpu.pipeline_mode<synchronous>, transform_indices = @transform_22, window_bounds = array<i64: 1, 32>}, {pipeline_mode = #tpu.pipeline_mode<synchronous>, transform_indices = @transform_23, window_bounds = array<i64: 1, 32>}, {pipeline_mode = #tpu.pipeline_mode<synchronous>, transform_indices = @transform_24, window_bounds = array<i64: 1, 32>}, {pipeline_mode = #tpu.pipeline_mode<synchronous>, transform_indices = @transform_25, window_bounds = array<i64: 32, 128>}, {pipeline_mode = #tpu.pipeline_mode<synchronous>, transform_indices = @transform_26, window_bounds = array<i64: 1, 128>}, {pipeline_mode = #tpu.pipeline_mode<synchronous>, transform_indices = @transform_27, window_bounds = array<i64: 128, 32>}, {pipeline_mode = #tpu.pipeline_mode<synchronous>, transform_indices = @transform_28, window_bounds = array<i64: 1, 32>}, {pipeline_mode = #tpu.pipeline_mode<synchronous>, transform_indices = @transform_29, window_bounds = array<i64: 1, 32>}, {pipeline_mode = #tpu.pipeline_mode<synchronous>, transform_indices = @transform_30, window_bounds = array<i64: 1, 32>}, {pipeline_mode = #tpu.pipeline_mode<synchronous>, transform_indices = @transform_31, window_bounds = array<i64: 32, 32>}, {pipeline_mode = #tpu.pipeline_mode<synchronous>, transform_indices = @transform_32, window_bounds = array<i64: 1, 32>}, {transform_indices = @transform_33, window_bounds = array<i64: 1, 1, 32>}, {transform_indices = @transform_34, window_bounds = array<i64: 1, 8, 32>}]} {
    %c0 = arith.constant 0 : index
    %c0_0 = arith.constant 0 : index
    %c0_1 = arith.constant 0 : index
    %0 = vector.load %arg1[%c0, %c0_0, %c0_1] : memref<1x1x16xf32, #tpu.memory_space<vmem>>, vector<1x1x16xf32>
    %1 = vector.shape_cast %0 : vector<1x1x16xf32> to vector<1x16xf32>
    %c0_2 = arith.constant 0 : index
    %c0_3 = arith.constant 0 : index
    %c0_4 = arith.constant 0 : index
    %2 = vector.load %arg2[%c0_2, %c0_3, %c0_4] : memref<1x8x32xf32, #tpu.memory_space<vmem>>, vector<1x8x32xf32>
    %3 = vector.shape_cast %2 : vector<1x8x32xf32> to vector<8x32xf32>
    %c0_5 = arith.constant 0 : index
    %c0_6 = arith.constant 0 : index
    %4 = vector.load %arg3[%c0_5, %c0_6] : memref<16x32xf32, #tpu.memory_space<vmem>>, vector<16x32xf32>
    %c0_7 = arith.constant 0 : index
    %c0_8 = arith.constant 0 : index
    %5 = vector.load %arg4[%c0_7, %c0_8] : memref<1x32xf32, #tpu.memory_space<vmem>>, vector<1x32xf32>
    %c0_9 = arith.constant 0 : index
    %c0_10 = arith.constant 0 : index
    %6 = vector.load %arg5[%c0_9, %c0_10] : memref<8x32xf32, #tpu.memory_space<vmem>>, vector<8x32xf32>
    %cst = arith.constant dense<0.000000e+00> : vector<1x32xf32>
    %7 = tpu.matmul %1, %4, %cst {dimension_numbers = #tpu.dot_dimension_numbers<[1], [0], [0], [1], [0, 0, 1, 1], [], []>} : vector<1x16xf32>, vector<16x32xf32>, vector<1x32xf32> -> vector<1x32xf32>
    %8 = arith.addf %7, %5 : vector<1x32xf32>
    %9 = vector.extract_strided_slice %3 {offsets = [1, 0], sizes = [7, 32], strides = [1, 1]} : vector<8x32xf32> to vector<7x32xf32>
    %10 = tpu.concatenate %9, %8 in 0 : vector<7x32xf32>, vector<1x32xf32> -> vector<8x32xf32>
    %c0_11 = arith.constant 0 : index
    %c0_12 = arith.constant 0 : index
    %c0_13 = arith.constant 0 : index
    %11 = vector.load %arg35[%c0_11, %c0_12, %c0_13] : memref<1x8x32xf32, #tpu.memory_space<vmem>>, vector<1x8x32xf32>
    %12 = vector.shape_cast %11 : vector<1x8x32xf32> to vector<8x32xf32>
    %13 = vector.shape_cast %10 : vector<8x32xf32> to vector<1x8x32xf32>
    tpu.vector_store %arg35[%c0_11, %c0_12, %c0_13], %13 {strides = array<i32>} : memref<1x8x32xf32, #tpu.memory_space<vmem>>, vector<1x8x32xf32>,
    %14 = arith.addf %10, %6 : vector<8x32xf32>
    %15 = tpu.iota {dimensions = array<i32: 0>} : vector<8x8xi32>
    %16 = tpu.iota {dimensions = array<i32: 1>} : vector<8x8xi32>
    %17 = arith.cmpi sle, %16, %15 : vector<8x8xi32>
    %c0_14 = arith.constant 0 : index
    %c0_15 = arith.constant 0 : index
    %18 = vector.load %arg6[%c0_14, %c0_15] : memref<1x32xf32, #tpu.memory_space<vmem>>, vector<1x32xf32>
    %c0_16 = arith.constant 0 : index
    %c0_17 = arith.constant 0 : index
    %19 = vector.load %arg7[%c0_16, %c0_17] : memref<1x32xf32, #tpu.memory_space<vmem>>, vector<1x32xf32>
    %c0_18 = arith.constant 0 : index
    %c0_19 = arith.constant 0 : index
    %20 = vector.load %arg8[%c0_18, %c0_19] : memref<32x96xf32, #tpu.memory_space<vmem>>, vector<32x96xf32>
    %c0_20 = arith.constant 0 : index
    %c0_21 = arith.constant 0 : index
    %21 = vector.load %arg9[%c0_20, %c0_21] : memref<1x96xf32, #tpu.memory_space<vmem>>, vector<1x96xf32>
    %c0_22 = arith.constant 0 : index
    %c0_23 = arith.constant 0 : index
    %22 = vector.load %arg10[%c0_22, %c0_23] : memref<32x32xf32, #tpu.memory_space<vmem>>, vector<32x32xf32>
    %c0_24 = arith.constant 0 : index
    %c0_25 = arith.constant 0 : index
    %23 = vector.load %arg11[%c0_24, %c0_25] : memref<1x32xf32, #tpu.memory_space<vmem>>, vector<1x32xf32>
    %c0_26 = arith.constant 0 : index
    %c0_27 = arith.constant 0 : index
    %24 = vector.load %arg12[%c0_26, %c0_27] : memref<1x32xf32, #tpu.memory_space<vmem>>, vector<1x32xf32>
    %c0_28 = arith.constant 0 : index
    %c0_29 = arith.constant 0 : index
    %25 = vector.load %arg13[%c0_28, %c0_29] : memref<1x32xf32, #tpu.memory_space<vmem>>, vector<1x32xf32>
    %c0_30 = arith.constant 0 : index
    %c0_31 = arith.constant 0 : index
    %26 = vector.load %arg14[%c0_30, %c0_31] : memref<32x128xf32, #tpu.memory_space<vmem>>, vector<32x128xf32>
    %c0_32 = arith.constant 0 : index
    %c0_33 = arith.constant 0 : index
    %27 = vector.load %arg15[%c0_32, %c0_33] : memref<1x128xf32, #tpu.memory_space<vmem>>, vector<1x128xf32>
    %c0_34 = arith.constant 0 : index
    %c0_35 = arith.constant 0 : index
    %28 = vector.load %arg16[%c0_34, %c0_35] : memref<128x32xf32, #tpu.memory_space<vmem>>, vector<128x32xf32>
    %c0_36 = arith.constant 0 : index
    %c0_37 = arith.constant 0 : index
    %29 = vector.load %arg17[%c0_36, %c0_37] : memref<1x32xf32, #tpu.memory_space<vmem>>, vector<1x32xf32>
    %cst_38 = arith.constant dense<0.000000e+00> : vector<8xf32>
    %30 = vector.multi_reduction <add>, %14, %cst_38 [1] : vector<8x32xf32> to vector<8xf32>
    %31 = vector.shape_cast %30 : vector<8xf32> to vector<8x1xf32>
    %cst_39 = arith.constant 3.200000e+01 : f32
    %32 = vector.broadcast %cst_39 : f32 to vector<8x1xf32>
    %33 = arith.divf %31, %32 : vector<8x1xf32>
    %34 = vector.broadcast %33 : vector<8x1xf32> to vector<8x32xf32>
    %35 = arith.subf %14, %34 : vector<8x32xf32>
    %36 = arith.mulf %35, %35 : vector<8x32xf32>
    %cst_40 = arith.constant dense<0.000000e+00> : vector<8xf32>
    %37 = vector.multi_reduction <add>, %36, %cst_40 [1] : vector<8x32xf32> to vector<8xf32>
    %38 = vector.shape_cast %37 : vector<8xf32> to vector<8x1xf32>
    %cst_41 = arith.constant 3.200000e+01 : f32
    %39 = vector.broadcast %cst_41 : f32 to vector<8x1xf32>
    %40 = arith.divf %38, %39 : vector<8x1xf32>
    %41 = vector.broadcast %33 : vector<8x1xf32> to vector<8x32xf32>
    %42 = arith.subf %14, %41 : vector<8x32xf32>
    %cst_42 = arith.constant 9.99999974E-6 : f32
    %43 = vector.broadcast %cst_42 : f32 to vector<8x1xf32>
    %44 = arith.addf %40, %43 : vector<8x1xf32>
    %45 = math.rsqrt %44 : vector<8x1xf32>
    %46 = vector.broadcast %45 : vector<8x1xf32> to vector<8x32xf32>
    %47 = arith.mulf %42, %46 : vector<8x32xf32>
    %48 = vector.broadcast %18 : vector<1x32xf32> to vector<8x32xf32>
    %49 = arith.mulf %47, %48 : vector<8x32xf32>
    %50 = vector.broadcast %19 : vector<1x32xf32> to vector<8x32xf32>
    %51 = arith.addf %49, %50 : vector<8x32xf32>
    %cst_43 = arith.constant dense<0.000000e+00> : vector<8x96xf32>
    %52 = tpu.matmul %51, %20, %cst_43 {dimension_numbers = #tpu.dot_dimension_numbers<[1], [0], [0], [1], [0, 0, 1, 1], [], []>} : vector<8x32xf32>, vector<32x96xf32>, vector<8x96xf32> -> vector<8x96xf32>
    %53 = vector.broadcast %21 : vector<1x96xf32> to vector<8x96xf32>
    %54 = arith.addf %52, %53 : vector<8x96xf32>
    %cst_44 = arith.constant 0.000000e+00 : f32
    %55 = vector.broadcast %cst_44 : f32 to vector<8x32xf32>
    %56 = vector.extract_strided_slice %54 {offsets = [0, 0], sizes = [8, 8], strides = [1, 1]} : vector<8x96xf32> to vector<8x8xf32>
    %57 = vector.extract_strided_slice %54 {offsets = [0, 32], sizes = [8, 8], strides = [1, 1]} : vector<8x96xf32> to vector<8x8xf32>
    %58 = vector.extract_strided_slice %54 {offsets = [0, 64], sizes = [8, 8], strides = [1, 1]} : vector<8x96xf32> to vector<8x8xf32>
    %59 = tpu.transpose %57, [1, 0] : vector<8x8xf32> -> vector<8x8xf32>
    %cst_45 = arith.constant dense<0.000000e+00> : vector<8x8xf32>
    %60 = tpu.matmul %56, %59, %cst_45 {dimension_numbers = #tpu.dot_dimension_numbers<[1], [0], [0], [1], [0, 0, 1, 1], [], []>} : vector<8x8xf32>, vector<8x8xf32>, vector<8x8xf32> -> vector<8x8xf32>
    %cst_46 = arith.constant 0.353553385 : f32
    %61 = vector.broadcast %cst_46 : f32 to vector<8x8xf32>
    %62 = arith.mulf %60, %61 : vector<8x8xf32>
    %cst_47 = arith.constant -1.000000e+30 : f32
    %63 = vector.broadcast %cst_47 : f32 to vector<8x8xf32>
    %64 = arith.select %17, %62, %63 : vector<8x8xi1>, vector<8x8xf32>
    %cst_48 = arith.constant dense<0xFF800000> : vector<8xf32>
    %65 = vector.multi_reduction <maximumf>, %64, %cst_48 [1] : vector<8x8xf32> to vector<8xf32>
    %66 = vector.shape_cast %65 : vector<8xf32> to vector<8x1xf32>
    %67 = vector.broadcast %66 : vector<8x1xf32> to vector<8x8xf32>
    %68 = arith.subf %64, %67 : vector<8x8xf32>
    %69 = math.exp %68 : vector<8x8xf32>
    %cst_49 = arith.constant dense<0.000000e+00> : vector<8xf32>
    %70 = vector.multi_reduction <add>, %69, %cst_49 [1] : vector<8x8xf32> to vector<8xf32>
    %71 = vector.shape_cast %70 : vector<8xf32> to vector<8x1xf32>
    %72 = tpu.reciprocal %71 {approx = true} : vector<8x1xf32> -> vector<8x1xf32>
    %73 = vector.broadcast %72 : vector<8x1xf32> to vector<8x8xf32>
    %74 = arith.mulf %69, %73 : vector<8x8xf32>
    %cst_50 = arith.constant dense<0.000000e+00> : vector<8x8xf32>
    %75 = tpu.matmul %74, %58, %cst_50 {dimension_numbers = #tpu.dot_dimension_numbers<[1], [0], [0], [1], [0, 0, 1, 1], [], []>} : vector<8x8xf32>, vector<8x8xf32>, vector<8x8xf32> -> vector<8x8xf32>
    %76 = vector.extract_strided_slice %22 {offsets = [0, 0], sizes = [8, 32], strides = [1, 1]} : vector<32x32xf32> to vector<8x32xf32>
    %cst_51 = arith.constant dense<0.000000e+00> : vector<8x32xf32>
    %77 = tpu.matmul %75, %76, %cst_51 {dimension_numbers = #tpu.dot_dimension_numbers<[1], [0], [0], [1], [0, 0, 1, 1], [], []>} : vector<8x8xf32>, vector<8x32xf32>, vector<8x32xf32> -> vector<8x32xf32>
    %78 = arith.addf %55, %77 : vector<8x32xf32>
    %79 = vector.extract_strided_slice %54 {offsets = [0, 8], sizes = [8, 8], strides = [1, 1]} : vector<8x96xf32> to vector<8x8xf32>
    %80 = vector.extract_strided_slice %54 {offsets = [0, 40], sizes = [8, 8], strides = [1, 1]} : vector<8x96xf32> to vector<8x8xf32>
    %81 = vector.extract_strided_slice %54 {offsets = [0, 72], sizes = [8, 8], strides = [1, 1]} : vector<8x96xf32> to vector<8x8xf32>
    %82 = tpu.transpose %80, [1, 0] : vector<8x8xf32> -> vector<8x8xf32>
    %cst_52 = arith.constant dense<0.000000e+00> : vector<8x8xf32>
    %83 = tpu.matmul %79, %82, %cst_52 {dimension_numbers = #tpu.dot_dimension_numbers<[1], [0], [0], [1], [0, 0, 1, 1], [], []>} : vector<8x8xf32>, vector<8x8xf32>, vector<8x8xf32> -> vector<8x8xf32>
    %cst_53 = arith.constant 0.353553385 : f32
    %84 = vector.broadcast %cst_53 : f32 to vector<8x8xf32>
    %85 = arith.mulf %83, %84 : vector<8x8xf32>
    %cst_54 = arith.constant -1.000000e+30 : f32
    %86 = vector.broadcast %cst_54 : f32 to vector<8x8xf32>
    %87 = arith.select %17, %85, %86 : vector<8x8xi1>, vector<8x8xf32>
    %cst_55 = arith.constant dense<0xFF800000> : vector<8xf32>
    %88 = vector.multi_reduction <maximumf>, %87, %cst_55 [1] : vector<8x8xf32> to vector<8xf32>
    %89 = vector.shape_cast %88 : vector<8xf32> to vector<8x1xf32>
    %90 = vector.broadcast %89 : vector<8x1xf32> to vector<8x8xf32>
    %91 = arith.subf %87, %90 : vector<8x8xf32>
    %92 = math.exp %91 : vector<8x8xf32>
    %cst_56 = arith.constant dense<0.000000e+00> : vector<8xf32>
    %93 = vector.multi_reduction <add>, %92, %cst_56 [1] : vector<8x8xf32> to vector<8xf32>
    %94 = vector.shape_cast %93 : vector<8xf32> to vector<8x1xf32>
    %95 = tpu.reciprocal %94 {approx = true} : vector<8x1xf32> -> vector<8x1xf32>
    %96 = vector.broadcast %95 : vector<8x1xf32> to vector<8x8xf32>
    %97 = arith.mulf %92, %96 : vector<8x8xf32>
    %cst_57 = arith.constant dense<0.000000e+00> : vector<8x8xf32>
    %98 = tpu.matmul %97, %81, %cst_57 {dimension_numbers = #tpu.dot_dimension_numbers<[1], [0], [0], [1], [0, 0, 1, 1], [], []>} : vector<8x8xf32>, vector<8x8xf32>, vector<8x8xf32> -> vector<8x8xf32>
    %99 = vector.extract_strided_slice %22 {offsets = [8, 0], sizes = [8, 32], strides = [1, 1]} : vector<32x32xf32> to vector<8x32xf32>
    %cst_58 = arith.constant dense<0.000000e+00> : vector<8x32xf32>
    %100 = tpu.matmul %98, %99, %cst_58 {dimension_numbers = #tpu.dot_dimension_numbers<[1], [0], [0], [1], [0, 0, 1, 1], [], []>} : vector<8x8xf32>, vector<8x32xf32>, vector<8x32xf32> -> vector<8x32xf32>
    %101 = arith.addf %78, %100 : vector<8x32xf32>
    %102 = vector.extract_strided_slice %54 {offsets = [0, 16], sizes = [8, 8], strides = [1, 1]} : vector<8x96xf32> to vector<8x8xf32>
    %103 = vector.extract_strided_slice %54 {offsets = [0, 48], sizes = [8, 8], strides = [1, 1]} : vector<8x96xf32> to vector<8x8xf32>
    %104 = vector.extract_strided_slice %54 {offsets = [0, 80], sizes = [8, 8], strides = [1, 1]} : vector<8x96xf32> to vector<8x8xf32>
    %105 = tpu.transpose %103, [1, 0] : vector<8x8xf32> -> vector<8x8xf32>
    %cst_59 = arith.constant dense<0.000000e+00> : vector<8x8xf32>
    %106 = tpu.matmul %102, %105, %cst_59 {dimension_numbers = #tpu.dot_dimension_numbers<[1], [0], [0], [1], [0, 0, 1, 1], [], []>} : vector<8x8xf32>, vector<8x8xf32>, vector<8x8xf32> -> vector<8x8xf32>
    %cst_60 = arith.constant 0.353553385 : f32
    %107 = vector.broadcast %cst_60 : f32 to vector<8x8xf32>
    %108 = arith.mulf %106, %107 : vector<8x8xf32>
    %cst_61 = arith.constant -1.000000e+30 : f32
    %109 = vector.broadcast %cst_61 : f32 to vector<8x8xf32>
    %110 = arith.select %17, %108, %109 : vector<8x8xi1>, vector<8x8xf32>
    %cst_62 = arith.constant dense<0xFF800000> : vector<8xf32>
    %111 = vector.multi_reduction <maximumf>, %110, %cst_62 [1] : vector<8x8xf32> to vector<8xf32>
    %112 = vector.shape_cast %111 : vector<8xf32> to vector<8x1xf32>
    %113 = vector.broadcast %112 : vector<8x1xf32> to vector<8x8xf32>
    %114 = arith.subf %110, %113 : vector<8x8xf32>
    %115 = math.exp %114 : vector<8x8xf32>
    %cst_63 = arith.constant dense<0.000000e+00> : vector<8xf32>
    %116 = vector.multi_reduction <add>, %115, %cst_63 [1] : vector<8x8xf32> to vector<8xf32>
    %117 = vector.shape_cast %116 : vector<8xf32> to vector<8x1xf32>
    %118 = tpu.reciprocal %117 {approx = true} : vector<8x1xf32> -> vector<8x1xf32>
    %119 = vector.broadcast %118 : vector<8x1xf32> to vector<8x8xf32>
    %120 = arith.mulf %115, %119 : vector<8x8xf32>
    %cst_64 = arith.constant dense<0.000000e+00> : vector<8x8xf32>
    %121 = tpu.matmul %120, %104, %cst_64 {dimension_numbers = #tpu.dot_dimension_numbers<[1], [0], [0], [1], [0, 0, 1, 1], [], []>} : vector<8x8xf32>, vector<8x8xf32>, vector<8x8xf32> -> vector<8x8xf32>
    %122 = vector.extract_strided_slice %22 {offsets = [16, 0], sizes = [8, 32], strides = [1, 1]} : vector<32x32xf32> to vector<8x32xf32>
    %cst_65 = arith.constant dense<0.000000e+00> : vector<8x32xf32>
    %123 = tpu.matmul %121, %122, %cst_65 {dimension_numbers = #tpu.dot_dimension_numbers<[1], [0], [0], [1], [0, 0, 1, 1], [], []>} : vector<8x8xf32>, vector<8x32xf32>, vector<8x32xf32> -> vector<8x32xf32>
    %124 = arith.addf %101, %123 : vector<8x32xf32>
    %125 = vector.extract_strided_slice %54 {offsets = [0, 24], sizes = [8, 8], strides = [1, 1]} : vector<8x96xf32> to vector<8x8xf32>
    %126 = vector.extract_strided_slice %54 {offsets = [0, 56], sizes = [8, 8], strides = [1, 1]} : vector<8x96xf32> to vector<8x8xf32>
    %127 = vector.extract_strided_slice %54 {offsets = [0, 88], sizes = [8, 8], strides = [1, 1]} : vector<8x96xf32> to vector<8x8xf32>
    %128 = tpu.transpose %126, [1, 0] : vector<8x8xf32> -> vector<8x8xf32>
    %cst_66 = arith.constant dense<0.000000e+00> : vector<8x8xf32>
    %129 = tpu.matmul %125, %128, %cst_66 {dimension_numbers = #tpu.dot_dimension_numbers<[1], [0], [0], [1], [0, 0, 1, 1], [], []>} : vector<8x8xf32>, vector<8x8xf32>, vector<8x8xf32> -> vector<8x8xf32>
    %cst_67 = arith.constant 0.353553385 : f32
    %130 = vector.broadcast %cst_67 : f32 to vector<8x8xf32>
    %131 = arith.mulf %129, %130 : vector<8x8xf32>
    %cst_68 = arith.constant -1.000000e+30 : f32
    %132 = vector.broadcast %cst_68 : f32 to vector<8x8xf32>
    %133 = arith.select %17, %131, %132 : vector<8x8xi1>, vector<8x8xf32>
    %cst_69 = arith.constant dense<0xFF800000> : vector<8xf32>
    %134 = vector.multi_reduction <maximumf>, %133, %cst_69 [1] : vector<8x8xf32> to vector<8xf32>
    %135 = vector.shape_cast %134 : vector<8xf32> to vector<8x1xf32>
    %136 = vector.broadcast %135 : vector<8x1xf32> to vector<8x8xf32>
    %137 = arith.subf %133, %136 : vector<8x8xf32>
    %138 = math.exp %137 : vector<8x8xf32>
    %cst_70 = arith.constant dense<0.000000e+00> : vector<8xf32>
    %139 = vector.multi_reduction <add>, %138, %cst_70 [1] : vector<8x8xf32> to vector<8xf32>
    %140 = vector.shape_cast %139 : vector<8xf32> to vector<8x1xf32>
    %141 = tpu.reciprocal %140 {approx = true} : vector<8x1xf32> -> vector<8x1xf32>
    %142 = vector.broadcast %141 : vector<8x1xf32> to vector<8x8xf32>
    %143 = arith.mulf %138, %142 : vector<8x8xf32>
    %cst_71 = arith.constant dense<0.000000e+00> : vector<8x8xf32>
    %144 = tpu.matmul %143, %127, %cst_71 {dimension_numbers = #tpu.dot_dimension_numbers<[1], [0], [0], [1], [0, 0, 1, 1], [], []>} : vector<8x8xf32>, vector<8x8xf32>, vector<8x8xf32> -> vector<8x8xf32>
    %145 = vector.extract_strided_slice %22 {offsets = [24, 0], sizes = [8, 32], strides = [1, 1]} : vector<32x32xf32> to vector<8x32xf32>
    %cst_72 = arith.constant dense<0.000000e+00> : vector<8x32xf32>
    %146 = tpu.matmul %144, %145, %cst_72 {dimension_numbers = #tpu.dot_dimension_numbers<[1], [0], [0], [1], [0, 0, 1, 1], [], []>} : vector<8x8xf32>, vector<8x32xf32>, vector<8x32xf32> -> vector<8x32xf32>
    %147 = arith.addf %124, %146 : vector<8x32xf32>
    %148 = arith.addf %14, %147 : vector<8x32xf32>
    %149 = vector.broadcast %23 : vector<1x32xf32> to vector<8x32xf32>
    %150 = arith.addf %148, %149 : vector<8x32xf32>
    %cst_73 = arith.constant dense<0.000000e+00> : vector<8xf32>
    %151 = vector.multi_reduction <add>, %150, %cst_73 [1] : vector<8x32xf32> to vector<8xf32>
    %152 = vector.shape_cast %151 : vector<8xf32> to vector<8x1xf32>
    %cst_74 = arith.constant 3.200000e+01 : f32
    %153 = vector.broadcast %cst_74 : f32 to vector<8x1xf32>
    %154 = arith.divf %152, %153 : vector<8x1xf32>
    %155 = vector.broadcast %154 : vector<8x1xf32> to vector<8x32xf32>
    %156 = arith.subf %150, %155 : vector<8x32xf32>
    %157 = arith.mulf %156, %156 : vector<8x32xf32>
    %cst_75 = arith.constant dense<0.000000e+00> : vector<8xf32>
    %158 = vector.multi_reduction <add>, %157, %cst_75 [1] : vector<8x32xf32> to vector<8xf32>
    %159 = vector.shape_cast %158 : vector<8xf32> to vector<8x1xf32>
    %cst_76 = arith.constant 3.200000e+01 : f32
    %160 = vector.broadcast %cst_76 : f32 to vector<8x1xf32>
    %161 = arith.divf %159, %160 : vector<8x1xf32>
    %162 = vector.broadcast %154 : vector<8x1xf32> to vector<8x32xf32>
    %163 = arith.subf %150, %162 : vector<8x32xf32>
    %cst_77 = arith.constant 9.99999974E-6 : f32
    %164 = vector.broadcast %cst_77 : f32 to vector<8x1xf32>
    %165 = arith.addf %161, %164 : vector<8x1xf32>
    %166 = math.rsqrt %165 : vector<8x1xf32>
    %167 = vector.broadcast %166 : vector<8x1xf32> to vector<8x32xf32>
    %168 = arith.mulf %163, %167 : vector<8x32xf32>
    %169 = vector.broadcast %24 : vector<1x32xf32> to vector<8x32xf32>
    %170 = arith.mulf %168, %169 : vector<8x32xf32>
    %171 = vector.broadcast %25 : vector<1x32xf32> to vector<8x32xf32>
    %172 = arith.addf %170, %171 : vector<8x32xf32>
    %cst_78 = arith.constant dense<0.000000e+00> : vector<8x128xf32>
    %173 = tpu.matmul %172, %26, %cst_78 {dimension_numbers = #tpu.dot_dimension_numbers<[1], [0], [0], [1], [0, 0, 1, 1], [], []>} : vector<8x32xf32>, vector<32x128xf32>, vector<8x128xf32> -> vector<8x128xf32>
    %174 = vector.broadcast %27 : vector<1x128xf32> to vector<8x128xf32>
    %175 = arith.addf %173, %174 : vector<8x128xf32>
    %cst_79 = arith.constant 5.000000e-01 : f32
    %176 = vector.broadcast %cst_79 : f32 to vector<8x128xf32>
    %177 = arith.mulf %176, %175 : vector<8x128xf32>
    %cst_80 = arith.constant 4.471500e-02 : f32
    %178 = vector.broadcast %cst_80 : f32 to vector<8x128xf32>
    %179 = arith.mulf %178, %175 : vector<8x128xf32>
    %180 = arith.mulf %179, %175 : vector<8x128xf32>
    %181 = arith.mulf %180, %175 : vector<8x128xf32>
    %182 = arith.addf %175, %181 : vector<8x128xf32>
    %cst_81 = arith.constant 0.797884583 : f32
    %183 = vector.broadcast %cst_81 : f32 to vector<8x128xf32>
    %184 = arith.mulf %183, %182 : vector<8x128xf32>
    %185 = math.tanh %184 : vector<8x128xf32>
    %cst_82 = arith.constant 1.000000e+00 : f32
    %186 = vector.broadcast %cst_82 : f32 to vector<8x128xf32>
    %187 = arith.addf %186, %185 : vector<8x128xf32>
    %188 = arith.mulf %177, %187 : vector<8x128xf32>
    %cst_83 = arith.constant dense<0.000000e+00> : vector<8x32xf32>
    %189 = tpu.matmul %188, %28, %cst_83 {dimension_numbers = #tpu.dot_dimension_numbers<[1], [0], [0], [1], [0, 0, 1, 1], [], []>} : vector<8x128xf32>, vector<128x32xf32>, vector<8x32xf32> -> vector<8x32xf32>
    %190 = arith.addf %150, %189 : vector<8x32xf32>
    %191 = vector.broadcast %29 : vector<1x32xf32> to vector<8x32xf32>
    %192 = arith.addf %190, %191 : vector<8x32xf32>
    %c0_84 = arith.constant 0 : index
    %c0_85 = arith.constant 0 : index
    %193 = vector.load %arg18[%c0_84, %c0_85] : memref<1x32xf32, #tpu.memory_space<vmem>>, vector<1x32xf32>
    %c0_86 = arith.constant 0 : index
    %c0_87 = arith.constant 0 : index
    %194 = vector.load %arg19[%c0_86, %c0_87] : memref<1x32xf32, #tpu.memory_space<vmem>>, vector<1x32xf32>
    %c0_88 = arith.constant 0 : index
    %c0_89 = arith.constant 0 : index
    %195 = vector.load %arg20[%c0_88, %c0_89] : memref<32x96xf32, #tpu.memory_space<vmem>>, vector<32x96xf32>
    %c0_90 = arith.constant 0 : index
    %c0_91 = arith.constant 0 : index
    %196 = vector.load %arg21[%c0_90, %c0_91] : memref<1x96xf32, #tpu.memory_space<vmem>>, vector<1x96xf32>
    %c0_92 = arith.constant 0 : index
    %c0_93 = arith.constant 0 : index
    %197 = vector.load %arg22[%c0_92, %c0_93] : memref<32x32xf32, #tpu.memory_space<vmem>>, vector<32x32xf32>
    %c0_94 = arith.constant 0 : index
    %c0_95 = arith.constant 0 : index
    %198 = vector.load %arg23[%c0_94, %c0_95] : memref<1x32xf32, #tpu.memory_space<vmem>>, vector<1x32xf32>
    %c0_96 = arith.constant 0 : index
    %c0_97 = arith.constant 0 : index
    %199 = vector.load %arg24[%c0_96, %c0_97] : memref<1x32xf32, #tpu.memory_space<vmem>>, vector<1x32xf32>
    %c0_98 = arith.constant 0 : index
    %c0_99 = arith.constant 0 : index
    %200 = vector.load %arg25[%c0_98, %c0_99] : memref<1x32xf32, #tpu.memory_space<vmem>>, vector<1x32xf32>
    %c0_100 = arith.constant 0 : index
    %c0_101 = arith.constant 0 : index
    %201 = vector.load %arg26[%c0_100, %c0_101] : memref<32x128xf32, #tpu.memory_space<vmem>>, vector<32x128xf32>
    %c0_102 = arith.constant 0 : index
    %c0_103 = arith.constant 0 : index
    %202 = vector.load %arg27[%c0_102, %c0_103] : memref<1x128xf32, #tpu.memory_space<vmem>>, vector<1x128xf32>
    %c0_104 = arith.constant 0 : index
    %c0_105 = arith.constant 0 : index
    %203 = vector.load %arg28[%c0_104, %c0_105] : memref<128x32xf32, #tpu.memory_space<vmem>>, vector<128x32xf32>
    %c0_106 = arith.constant 0 : index
    %c0_107 = arith.constant 0 : index
    %204 = vector.load %arg29[%c0_106, %c0_107] : memref<1x32xf32, #tpu.memory_space<vmem>>, vector<1x32xf32>
    %cst_108 = arith.constant dense<0.000000e+00> : vector<8xf32>
    %205 = vector.multi_reduction <add>, %192, %cst_108 [1] : vector<8x32xf32> to vector<8xf32>
    %206 = vector.shape_cast %205 : vector<8xf32> to vector<8x1xf32>
    %cst_109 = arith.constant 3.200000e+01 : f32
    %207 = vector.broadcast %cst_109 : f32 to vector<8x1xf32>
    %208 = arith.divf %206, %207 : vector<8x1xf32>
    %209 = vector.broadcast %208 : vector<8x1xf32> to vector<8x32xf32>
    %210 = arith.subf %192, %209 : vector<8x32xf32>
    %211 = arith.mulf %210, %210 : vector<8x32xf32>
    %cst_110 = arith.constant dense<0.000000e+00> : vector<8xf32>
    %212 = vector.multi_reduction <add>, %211, %cst_110 [1] : vector<8x32xf32> to vector<8xf32>
    %213 = vector.shape_cast %212 : vector<8xf32> to vector<8x1xf32>
    %cst_111 = arith.constant 3.200000e+01 : f32
    %214 = vector.broadcast %cst_111 : f32 to vector<8x1xf32>
    %215 = arith.divf %213, %214 : vector<8x1xf32>
    %216 = vector.broadcast %208 : vector<8x1xf32> to vector<8x32xf32>
    %217 = arith.subf %192, %216 : vector<8x32xf32>
    %cst_112 = arith.constant 9.99999974E-6 : f32
    %218 = vector.broadcast %cst_112 : f32 to vector<8x1xf32>
    %219 = arith.addf %215, %218 : vector<8x1xf32>
    %220 = math.rsqrt %219 : vector<8x1xf32>
    %221 = vector.broadcast %220 : vector<8x1xf32> to vector<8x32xf32>
    %222 = arith.mulf %217, %221 : vector<8x32xf32>
    %223 = vector.broadcast %193 : vector<1x32xf32> to vector<8x32xf32>
    %224 = arith.mulf %222, %223 : vector<8x32xf32>
    %225 = vector.broadcast %194 : vector<1x32xf32> to vector<8x32xf32>
    %226 = arith.addf %224, %225 : vector<8x32xf32>
    %cst_113 = arith.constant dense<0.000000e+00> : vector<8x96xf32>
    %227 = tpu.matmul %226, %195, %cst_113 {dimension_numbers = #tpu.dot_dimension_numbers<[1], [0], [0], [1], [0, 0, 1, 1], [], []>} : vector<8x32xf32>, vector<32x96xf32>, vector<8x96xf32> -> vector<8x96xf32>
    %228 = vector.broadcast %196 : vector<1x96xf32> to vector<8x96xf32>
    %229 = arith.addf %227, %228 : vector<8x96xf32>
    %cst_114 = arith.constant 0.000000e+00 : f32
    %230 = vector.broadcast %cst_114 : f32 to vector<8x32xf32>
    %231 = vector.extract_strided_slice %229 {offsets = [0, 0], sizes = [8, 8], strides = [1, 1]} : vector<8x96xf32> to vector<8x8xf32>
    %232 = vector.extract_strided_slice %229 {offsets = [0, 32], sizes = [8, 8], strides = [1, 1]} : vector<8x96xf32> to vector<8x8xf32>
    %233 = vector.extract_strided_slice %229 {offsets = [0, 64], sizes = [8, 8], strides = [1, 1]} : vector<8x96xf32> to vector<8x8xf32>
    %234 = tpu.transpose %232, [1, 0] : vector<8x8xf32> -> vector<8x8xf32>
    %cst_115 = arith.constant dense<0.000000e+00> : vector<8x8xf32>
    %235 = tpu.matmul %231, %234, %cst_115 {dimension_numbers = #tpu.dot_dimension_numbers<[1], [0], [0], [1], [0, 0, 1, 1], [], []>} : vector<8x8xf32>, vector<8x8xf32>, vector<8x8xf32> -> vector<8x8xf32>
    %cst_116 = arith.constant 0.353553385 : f32
    %236 = vector.broadcast %cst_116 : f32 to vector<8x8xf32>
    %237 = arith.mulf %235, %236 : vector<8x8xf32>
    %cst_117 = arith.constant -1.000000e+30 : f32
    %238 = vector.broadcast %cst_117 : f32 to vector<8x8xf32>
    %239 = arith.select %17, %237, %238 : vector<8x8xi1>, vector<8x8xf32>
    %cst_118 = arith.constant dense<0xFF800000> : vector<8xf32>
    %240 = vector.multi_reduction <maximumf>, %239, %cst_118 [1] : vector<8x8xf32> to vector<8xf32>
    %241 = vector.shape_cast %240 : vector<8xf32> to vector<8x1xf32>
    %242 = vector.broadcast %241 : vector<8x1xf32> to vector<8x8xf32>
    %243 = arith.subf %239, %242 : vector<8x8xf32>
    %244 = math.exp %243 : vector<8x8xf32>
    %cst_119 = arith.constant dense<0.000000e+00> : vector<8xf32>
    %245 = vector.multi_reduction <add>, %244, %cst_119 [1] : vector<8x8xf32> to vector<8xf32>
    %246 = vector.shape_cast %245 : vector<8xf32> to vector<8x1xf32>
    %247 = tpu.reciprocal %246 {approx = true} : vector<8x1xf32> -> vector<8x1xf32>
    %248 = vector.broadcast %247 : vector<8x1xf32> to vector<8x8xf32>
    %249 = arith.mulf %244, %248 : vector<8x8xf32>
    %cst_120 = arith.constant dense<0.000000e+00> : vector<8x8xf32>
    %250 = tpu.matmul %249, %233, %cst_120 {dimension_numbers = #tpu.dot_dimension_numbers<[1], [0], [0], [1], [0, 0, 1, 1], [], []>} : vector<8x8xf32>, vector<8x8xf32>, vector<8x8xf32> -> vector<8x8xf32>
    %251 = vector.extract_strided_slice %197 {offsets = [0, 0], sizes = [8, 32], strides = [1, 1]} : vector<32x32xf32> to vector<8x32xf32>
    %cst_121 = arith.constant dense<0.000000e+00> : vector<8x32xf32>
    %252 = tpu.matmul %250, %251, %cst_121 {dimension_numbers = #tpu.dot_dimension_numbers<[1], [0], [0], [1], [0, 0, 1, 1], [], []>} : vector<8x8xf32>, vector<8x32xf32>, vector<8x32xf32> -> vector<8x32xf32>
    %253 = arith.addf %230, %252 : vector<8x32xf32>
    %254 = vector.extract_strided_slice %229 {offsets = [0, 8], sizes = [8, 8], strides = [1, 1]} : vector<8x96xf32> to vector<8x8xf32>
    %255 = vector.extract_strided_slice %229 {offsets = [0, 40], sizes = [8, 8], strides = [1, 1]} : vector<8x96xf32> to vector<8x8xf32>
    %256 = vector.extract_strided_slice %229 {offsets = [0, 72], sizes = [8, 8], strides = [1, 1]} : vector<8x96xf32> to vector<8x8xf32>
    %257 = tpu.transpose %255, [1, 0] : vector<8x8xf32> -> vector<8x8xf32>
    %cst_122 = arith.constant dense<0.000000e+00> : vector<8x8xf32>
    %258 = tpu.matmul %254, %257, %cst_122 {dimension_numbers = #tpu.dot_dimension_numbers<[1], [0], [0], [1], [0, 0, 1, 1], [], []>} : vector<8x8xf32>, vector<8x8xf32>, vector<8x8xf32> -> vector<8x8xf32>
    %cst_123 = arith.constant 0.353553385 : f32
    %259 = vector.broadcast %cst_123 : f32 to vector<8x8xf32>
    %260 = arith.mulf %258, %259 : vector<8x8xf32>
    %cst_124 = arith.constant -1.000000e+30 : f32
    %261 = vector.broadcast %cst_124 : f32 to vector<8x8xf32>
    %262 = arith.select %17, %260, %261 : vector<8x8xi1>, vector<8x8xf32>
    %cst_125 = arith.constant dense<0xFF800000> : vector<8xf32>
    %263 = vector.multi_reduction <maximumf>, %262, %cst_125 [1] : vector<8x8xf32> to vector<8xf32>
    %264 = vector.shape_cast %263 : vector<8xf32> to vector<8x1xf32>
    %265 = vector.broadcast %264 : vector<8x1xf32> to vector<8x8xf32>
    %266 = arith.subf %262, %265 : vector<8x8xf32>
    %267 = math.exp %266 : vector<8x8xf32>
    %cst_126 = arith.constant dense<0.000000e+00> : vector<8xf32>
    %268 = vector.multi_reduction <add>, %267, %cst_126 [1] : vector<8x8xf32> to vector<8xf32>
    %269 = vector.shape_cast %268 : vector<8xf32> to vector<8x1xf32>
    %270 = tpu.reciprocal %269 {approx = true} : vector<8x1xf32> -> vector<8x1xf32>
    %271 = vector.broadcast %270 : vector<8x1xf32> to vector<8x8xf32>
    %272 = arith.mulf %267, %271 : vector<8x8xf32>
    %cst_127 = arith.constant dense<0.000000e+00> : vector<8x8xf32>
    %273 = tpu.matmul %272, %256, %cst_127 {dimension_numbers = #tpu.dot_dimension_numbers<[1], [0], [0], [1], [0, 0, 1, 1], [], []>} : vector<8x8xf32>, vector<8x8xf32>, vector<8x8xf32> -> vector<8x8xf32>
    %274 = vector.extract_strided_slice %197 {offsets = [8, 0], sizes = [8, 32], strides = [1, 1]} : vector<32x32xf32> to vector<8x32xf32>
    %cst_128 = arith.constant dense<0.000000e+00> : vector<8x32xf32>
    %275 = tpu.matmul %273, %274, %cst_128 {dimension_numbers = #tpu.dot_dimension_numbers<[1], [0], [0], [1], [0, 0, 1, 1], [], []>} : vector<8x8xf32>, vector<8x32xf32>, vector<8x32xf32> -> vector<8x32xf32>
    %276 = arith.addf %253, %275 : vector<8x32xf32>
    %277 = vector.extract_strided_slice %229 {offsets = [0, 16], sizes = [8, 8], strides = [1, 1]} : vector<8x96xf32> to vector<8x8xf32>
    %278 = vector.extract_strided_slice %229 {offsets = [0, 48], sizes = [8, 8], strides = [1, 1]} : vector<8x96xf32> to vector<8x8xf32>
    %279 = vector.extract_strided_slice %229 {offsets = [0, 80], sizes = [8, 8], strides = [1, 1]} : vector<8x96xf32> to vector<8x8xf32>
    %280 = tpu.transpose %278, [1, 0] : vector<8x8xf32> -> vector<8x8xf32>
    %cst_129 = arith.constant dense<0.000000e+00> : vector<8x8xf32>
    %281 = tpu.matmul %277, %280, %cst_129 {dimension_numbers = #tpu.dot_dimension_numbers<[1], [0], [0], [1], [0, 0, 1, 1], [], []>} : vector<8x8xf32>, vector<8x8xf32>, vector<8x8xf32> -> vector<8x8xf32>
    %cst_130 = arith.constant 0.353553385 : f32
    %282 = vector.broadcast %cst_130 : f32 to vector<8x8xf32>
    %283 = arith.mulf %281, %282 : vector<8x8xf32>
    %cst_131 = arith.constant -1.000000e+30 : f32
    %284 = vector.broadcast %cst_131 : f32 to vector<8x8xf32>
    %285 = arith.select %17, %283, %284 : vector<8x8xi1>, vector<8x8xf32>
    %cst_132 = arith.constant dense<0xFF800000> : vector<8xf32>
    %286 = vector.multi_reduction <maximumf>, %285, %cst_132 [1] : vector<8x8xf32> to vector<8xf32>
    %287 = vector.shape_cast %286 : vector<8xf32> to vector<8x1xf32>
    %288 = vector.broadcast %287 : vector<8x1xf32> to vector<8x8xf32>
    %289 = arith.subf %285, %288 : vector<8x8xf32>
    %290 = math.exp %289 : vector<8x8xf32>
    %cst_133 = arith.constant dense<0.000000e+00> : vector<8xf32>
    %291 = vector.multi_reduction <add>, %290, %cst_133 [1] : vector<8x8xf32> to vector<8xf32>
    %292 = vector.shape_cast %291 : vector<8xf32> to vector<8x1xf32>
    %293 = tpu.reciprocal %292 {approx = true} : vector<8x1xf32> -> vector<8x1xf32>
    %294 = vector.broadcast %293 : vector<8x1xf32> to vector<8x8xf32>
    %295 = arith.mulf %290, %294 : vector<8x8xf32>
    %cst_134 = arith.constant dense<0.000000e+00> : vector<8x8xf32>
    %296 = tpu.matmul %295, %279, %cst_134 {dimension_numbers = #tpu.dot_dimension_numbers<[1], [0], [0], [1], [0, 0, 1, 1], [], []>} : vector<8x8xf32>, vector<8x8xf32>, vector<8x8xf32> -> vector<8x8xf32>
    %297 = vector.extract_strided_slice %197 {offsets = [16, 0], sizes = [8, 32], strides = [1, 1]} : vector<32x32xf32> to vector<8x32xf32>
    %cst_135 = arith.constant dense<0.000000e+00> : vector<8x32xf32>
    %298 = tpu.matmul %296, %297, %cst_135 {dimension_numbers = #tpu.dot_dimension_numbers<[1], [0], [0], [1], [0, 0, 1, 1], [], []>} : vector<8x8xf32>, vector<8x32xf32>, vector<8x32xf32> -> vector<8x32xf32>
    %299 = arith.addf %276, %298 : vector<8x32xf32>
    %300 = vector.extract_strided_slice %229 {offsets = [0, 24], sizes = [8, 8], strides = [1, 1]} : vector<8x96xf32> to vector<8x8xf32>
    %301 = vector.extract_strided_slice %229 {offsets = [0, 56], sizes = [8, 8], strides = [1, 1]} : vector<8x96xf32> to vector<8x8xf32>
    %302 = vector.extract_strided_slice %229 {offsets = [0, 88], sizes = [8, 8], strides = [1, 1]} : vector<8x96xf32> to vector<8x8xf32>
    %303 = tpu.transpose %301, [1, 0] : vector<8x8xf32> -> vector<8x8xf32>
    %cst_136 = arith.constant dense<0.000000e+00> : vector<8x8xf32>
    %304 = tpu.matmul %300, %303, %cst_136 {dimension_numbers = #tpu.dot_dimension_numbers<[1], [0], [0], [1], [0, 0, 1, 1], [], []>} : vector<8x8xf32>, vector<8x8xf32>, vector<8x8xf32> -> vector<8x8xf32>
    %cst_137 = arith.constant 0.353553385 : f32
    %305 = vector.broadcast %cst_137 : f32 to vector<8x8xf32>
    %306 = arith.mulf %304, %305 : vector<8x8xf32>
    %cst_138 = arith.constant -1.000000e+30 : f32
    %307 = vector.broadcast %cst_138 : f32 to vector<8x8xf32>
    %308 = arith.select %17, %306, %307 : vector<8x8xi1>, vector<8x8xf32>
    %cst_139 = arith.constant dense<0xFF800000> : vector<8xf32>
    %309 = vector.multi_reduction <maximumf>, %308, %cst_139 [1] : vector<8x8xf32> to vector<8xf32>
    %310 = vector.shape_cast %309 : vector<8xf32> to vector<8x1xf32>
    %311 = vector.broadcast %310 : vector<8x1xf32> to vector<8x8xf32>
    %312 = arith.subf %308, %311 : vector<8x8xf32>
    %313 = math.exp %312 : vector<8x8xf32>
    %cst_140 = arith.constant dense<0.000000e+00> : vector<8xf32>
    %314 = vector.multi_reduction <add>, %313, %cst_140 [1] : vector<8x8xf32> to vector<8xf32>
    %315 = vector.shape_cast %314 : vector<8xf32> to vector<8x1xf32>
    %316 = tpu.reciprocal %315 {approx = true} : vector<8x1xf32> -> vector<8x1xf32>
    %317 = vector.broadcast %316 : vector<8x1xf32> to vector<8x8xf32>
    %318 = arith.mulf %313, %317 : vector<8x8xf32>
    %cst_141 = arith.constant dense<0.000000e+00> : vector<8x8xf32>
    %319 = tpu.matmul %318, %302, %cst_141 {dimension_numbers = #tpu.dot_dimension_numbers<[1], [0], [0], [1], [0, 0, 1, 1], [], []>} : vector<8x8xf32>, vector<8x8xf32>, vector<8x8xf32> -> vector<8x8xf32>
    %320 = vector.extract_strided_slice %197 {offsets = [24, 0], sizes = [8, 32], strides = [1, 1]} : vector<32x32xf32> to vector<8x32xf32>
    %cst_142 = arith.constant dense<0.000000e+00> : vector<8x32xf32>
    %321 = tpu.matmul %319, %320, %cst_142 {dimension_numbers = #tpu.dot_dimension_numbers<[1], [0], [0], [1], [0, 0, 1, 1], [], []>} : vector<8x8xf32>, vector<8x32xf32>, vector<8x32xf32> -> vector<8x32xf32>
    %322 = arith.addf %299, %321 : vector<8x32xf32>
    %323 = arith.addf %192, %322 : vector<8x32xf32>
    %324 = vector.broadcast %198 : vector<1x32xf32> to vector<8x32xf32>
    %325 = arith.addf %323, %324 : vector<8x32xf32>
    %cst_143 = arith.constant dense<0.000000e+00> : vector<8xf32>
    %326 = vector.multi_reduction <add>, %325, %cst_143 [1] : vector<8x32xf32> to vector<8xf32>
    %327 = vector.shape_cast %326 : vector<8xf32> to vector<8x1xf32>
    %cst_144 = arith.constant 3.200000e+01 : f32
    %328 = vector.broadcast %cst_144 : f32 to vector<8x1xf32>
    %329 = arith.divf %327, %328 : vector<8x1xf32>
    %330 = vector.broadcast %329 : vector<8x1xf32> to vector<8x32xf32>
    %331 = arith.subf %325, %330 : vector<8x32xf32>
    %332 = arith.mulf %331, %331 : vector<8x32xf32>
    %cst_145 = arith.constant dense<0.000000e+00> : vector<8xf32>
    %333 = vector.multi_reduction <add>, %332, %cst_145 [1] : vector<8x32xf32> to vector<8xf32>
    %334 = vector.shape_cast %333 : vector<8xf32> to vector<8x1xf32>
    %cst_146 = arith.constant 3.200000e+01 : f32
    %335 = vector.broadcast %cst_146 : f32 to vector<8x1xf32>
    %336 = arith.divf %334, %335 : vector<8x1xf32>
    %337 = vector.broadcast %329 : vector<8x1xf32> to vector<8x32xf32>
    %338 = arith.subf %325, %337 : vector<8x32xf32>
    %cst_147 = arith.constant 9.99999974E-6 : f32
    %339 = vector.broadcast %cst_147 : f32 to vector<8x1xf32>
    %340 = arith.addf %336, %339 : vector<8x1xf32>
    %341 = math.rsqrt %340 : vector<8x1xf32>
    %342 = vector.broadcast %341 : vector<8x1xf32> to vector<8x32xf32>
    %343 = arith.mulf %338, %342 : vector<8x32xf32>
    %344 = vector.broadcast %199 : vector<1x32xf32> to vector<8x32xf32>
    %345 = arith.mulf %343, %344 : vector<8x32xf32>
    %346 = vector.broadcast %200 : vector<1x32xf32> to vector<8x32xf32>
    %347 = arith.addf %345, %346 : vector<8x32xf32>
    %cst_148 = arith.constant dense<0.000000e+00> : vector<8x128xf32>
    %348 = tpu.matmul %347, %201, %cst_148 {dimension_numbers = #tpu.dot_dimension_numbers<[1], [0], [0], [1], [0, 0, 1, 1], [], []>} : vector<8x32xf32>, vector<32x128xf32>, vector<8x128xf32> -> vector<8x128xf32>
    %349 = vector.broadcast %202 : vector<1x128xf32> to vector<8x128xf32>
    %350 = arith.addf %348, %349 : vector<8x128xf32>
    %cst_149 = arith.constant 5.000000e-01 : f32
    %351 = vector.broadcast %cst_149 : f32 to vector<8x128xf32>
    %352 = arith.mulf %351, %350 : vector<8x128xf32>
    %cst_150 = arith.constant 4.471500e-02 : f32
    %353 = vector.broadcast %cst_150 : f32 to vector<8x128xf32>
    %354 = arith.mulf %353, %350 : vector<8x128xf32>
    %355 = arith.mulf %354, %350 : vector<8x128xf32>
    %356 = arith.mulf %355, %350 : vector<8x128xf32>
    %357 = arith.addf %350, %356 : vector<8x128xf32>
    %cst_151 = arith.constant 0.797884583 : f32
    %358 = vector.broadcast %cst_151 : f32 to vector<8x128xf32>
    %359 = arith.mulf %358, %357 : vector<8x128xf32>
    %360 = math.tanh %359 : vector<8x128xf32>
    %cst_152 = arith.constant 1.000000e+00 : f32
    %361 = vector.broadcast %cst_152 : f32 to vector<8x128xf32>
    %362 = arith.addf %361, %360 : vector<8x128xf32>
    %363 = arith.mulf %352, %362 : vector<8x128xf32>
    %cst_153 = arith.constant dense<0.000000e+00> : vector<8x32xf32>
    %364 = tpu.matmul %363, %203, %cst_153 {dimension_numbers = #tpu.dot_dimension_numbers<[1], [0], [0], [1], [0, 0, 1, 1], [], []>} : vector<8x128xf32>, vector<128x32xf32>, vector<8x32xf32> -> vector<8x32xf32>
    %365 = arith.addf %325, %364 : vector<8x32xf32>
    %366 = vector.broadcast %204 : vector<1x32xf32> to vector<8x32xf32>
    %367 = arith.addf %365, %366 : vector<8x32xf32>
    %c0_154 = arith.constant 0 : index
    %c0_155 = arith.constant 0 : index
    %368 = vector.load %arg30[%c0_154, %c0_155] : memref<1x32xf32, #tpu.memory_space<vmem>>, vector<1x32xf32>
    %c0_156 = arith.constant 0 : index
    %c0_157 = arith.constant 0 : index
    %369 = vector.load %arg31[%c0_156, %c0_157] : memref<1x32xf32, #tpu.memory_space<vmem>>, vector<1x32xf32>
    %c0_158 = arith.constant 0 : index
    %c0_159 = arith.constant 0 : index
    %370 = vector.load %arg32[%c0_158, %c0_159] : memref<32x32xf32, #tpu.memory_space<vmem>>, vector<32x32xf32>
    %c0_160 = arith.constant 0 : index
    %c0_161 = arith.constant 0 : index
    %371 = vector.load %arg33[%c0_160, %c0_161] : memref<1x32xf32, #tpu.memory_space<vmem>>, vector<1x32xf32>
    %cst_162 = arith.constant dense<0.000000e+00> : vector<8xf32>
    %372 = vector.multi_reduction <add>, %367, %cst_162 [1] : vector<8x32xf32> to vector<8xf32>
    %373 = vector.shape_cast %372 : vector<8xf32> to vector<8x1xf32>
    %cst_163 = arith.constant 3.200000e+01 : f32
    %374 = vector.broadcast %cst_163 : f32 to vector<8x1xf32>
    %375 = arith.divf %373, %374 : vector<8x1xf32>
    %376 = vector.broadcast %375 : vector<8x1xf32> to vector<8x32xf32>
    %377 = arith.subf %367, %376 : vector<8x32xf32>
    %378 = arith.mulf %377, %377 : vector<8x32xf32>
    %cst_164 = arith.constant dense<0.000000e+00> : vector<8xf32>
    %379 = vector.multi_reduction <add>, %378, %cst_164 [1] : vector<8x32xf32> to vector<8xf32>
    %380 = vector.shape_cast %379 : vector<8xf32> to vector<8x1xf32>
    %cst_165 = arith.constant 3.200000e+01 : f32
    %381 = vector.broadcast %cst_165 : f32 to vector<8x1xf32>
    %382 = arith.divf %380, %381 : vector<8x1xf32>
    %383 = vector.broadcast %375 : vector<8x1xf32> to vector<8x32xf32>
    %384 = arith.subf %367, %383 : vector<8x32xf32>
    %cst_166 = arith.constant 9.99999974E-6 : f32
    %385 = vector.broadcast %cst_166 : f32 to vector<8x1xf32>
    %386 = arith.addf %382, %385 : vector<8x1xf32>
    %387 = math.rsqrt %386 : vector<8x1xf32>
    %388 = vector.broadcast %387 : vector<8x1xf32> to vector<8x32xf32>
    %389 = arith.mulf %384, %388 : vector<8x32xf32>
    %390 = vector.broadcast %368 : vector<1x32xf32> to vector<8x32xf32>
    %391 = arith.mulf %389, %390 : vector<8x32xf32>
    %392 = vector.broadcast %369 : vector<1x32xf32> to vector<8x32xf32>
    %393 = arith.addf %391, %392 : vector<8x32xf32>
    %cst_167 = arith.constant dense<0.000000e+00> : vector<8x32xf32>
    %394 = tpu.matmul %393, %370, %cst_167 {dimension_numbers = #tpu.dot_dimension_numbers<[1], [0], [0], [1], [0, 0, 1, 1], [], []>} : vector<8x32xf32>, vector<32x32xf32>, vector<8x32xf32> -> vector<8x32xf32>
    %395 = vector.broadcast %371 : vector<1x32xf32> to vector<8x32xf32>
    %396 = arith.addf %394, %395 : vector<8x32xf32>
    %397 = vector.extract_strided_slice %396 {offsets = [7, 0], sizes = [1, 32], strides = [1, 1]} : vector<8x32xf32> to vector<1x32xf32>
    %c0_168 = arith.constant 0 : index
    %c0_169 = arith.constant 0 : index
    %c0_170 = arith.constant 0 : index
    %398 = vector.load %arg34[%c0_168, %c0_169, %c0_170] : memref<1x1x32xf32, #tpu.memory_space<vmem>>, vector<1x1x32xf32>
    %399 = vector.shape_cast %398 : vector<1x1x32xf32> to vector<1x32xf32>
    %400 = vector.shape_cast %397 : vector<1x32xf32> to vector<1x1x32xf32>
    tpu.vector_store %arg34[%c0_168, %c0_169, %c0_170], %400 {strides = array<i32>} : memref<1x1x32xf32, #tpu.memory_space<vmem>>, vector<1x1x32xf32>,
    return
  }
  func.func @transform_0(%arg0: i32) -> (i32, i32, i32) {
    %c0_i32 = arith.constant 0 : i32
    %c0_i32_0 = arith.constant 0 : i32
    %c0_i32_1 = arith.constant 0 : i32
    return %arg0, %c0_i32, %c0_i32_0 : i32, i32, i32
  }
  func.func @transform_1(%arg0: i32) -> (i32, i32, i32) {
    %c0_i32 = arith.constant 0 : i32
    %c0_i32_0 = arith.constant 0 : i32
    %c0_i32_1 = arith.constant 0 : i32
    return %arg0, %c0_i32, %c0_i32_0 : i32, i32, i32
  }
  func.func @transform_2(%arg0: i32) -> (i32, i32) {
    %c0_i32 = arith.constant 0 : i32
    %c0_i32_0 = arith.constant 0 : i32
    %c0_i32_1 = arith.constant 0 : i32
    return %c0_i32, %c0_i32_0 : i32, i32
  }
  func.func @transform_3(%arg0: i32) -> (i32, i32) {
    %c0_i32 = arith.constant 0 : i32
    %c0_i32_0 = arith.constant 0 : i32
    %c0_i32_1 = arith.constant 0 : i32
    return %c0_i32, %c0_i32_0 : i32, i32
  }
  func.func @transform_4(%arg0: i32) -> (i32, i32) {
    %c0_i32 = arith.constant 0 : i32
    %c0_i32_0 = arith.constant 0 : i32
    %c0_i32_1 = arith.constant 0 : i32
    return %c0_i32, %c0_i32_0 : i32, i32
  }
  func.func @transform_5(%arg0: i32) -> (i32, i32) {
    %c0_i32 = arith.constant 0 : i32
    %c0_i32_0 = arith.constant 0 : i32
    %c0_i32_1 = arith.constant 0 : i32
    return %c0_i32, %c0_i32_0 : i32, i32
  }
  func.func @transform_6(%arg0: i32) -> (i32, i32) {
    %c0_i32 = arith.constant 0 : i32
    %c0_i32_0 = arith.constant 0 : i32
    %c0_i32_1 = arith.constant 0 : i32
    return %c0_i32, %c0_i32_0 : i32, i32
  }
  func.func @transform_7(%arg0: i32) -> (i32, i32) {
    %c0_i32 = arith.constant 0 : i32
    %c0_i32_0 = arith.constant 0 : i32
    %c0_i32_1 = arith.constant 0 : i32
    return %c0_i32, %c0_i32_0 : i32, i32
  }
  func.func @transform_8(%arg0: i32) -> (i32, i32) {
    %c0_i32 = arith.constant 0 : i32
    %c0_i32_0 = arith.constant 0 : i32
    %c0_i32_1 = arith.constant 0 : i32
    return %c0_i32, %c0_i32_0 : i32, i32
  }
  func.func @transform_9(%arg0: i32) -> (i32, i32) {
    %c0_i32 = arith.constant 0 : i32
    %c0_i32_0 = arith.constant 0 : i32
    %c0_i32_1 = arith.constant 0 : i32
    return %c0_i32, %c0_i32_0 : i32, i32
  }
  func.func @transform_10(%arg0: i32) -> (i32, i32) {
    %c0_i32 = arith.constant 0 : i32
    %c0_i32_0 = arith.constant 0 : i32
    %c0_i32_1 = arith.constant 0 : i32
    return %c0_i32, %c0_i32_0 : i32, i32
  }
  func.func @transform_11(%arg0: i32) -> (i32, i32) {
    %c0_i32 = arith.constant 0 : i32
    %c0_i32_0 = arith.constant 0 : i32
    %c0_i32_1 = arith.constant 0 : i32
    return %c0_i32, %c0_i32_0 : i32, i32
  }
  func.func @transform_12(%arg0: i32) -> (i32, i32) {
    %c0_i32 = arith.constant 0 : i32
    %c0_i32_0 = arith.constant 0 : i32
    %c0_i32_1 = arith.constant 0 : i32
    return %c0_i32, %c0_i32_0 : i32, i32
  }
  func.func @transform_13(%arg0: i32) -> (i32, i32) {
    %c0_i32 = arith.constant 0 : i32
    %c0_i32_0 = arith.constant 0 : i32
    %c0_i32_1 = arith.constant 0 : i32
    return %c0_i32, %c0_i32_0 : i32, i32
  }
  func.func @transform_14(%arg0: i32) -> (i32, i32) {
    %c0_i32 = arith.constant 0 : i32
    %c0_i32_0 = arith.constant 0 : i32
    %c0_i32_1 = arith.constant 0 : i32
    return %c0_i32, %c0_i32_0 : i32, i32
  }
  func.func @transform_15(%arg0: i32) -> (i32, i32) {
    %c0_i32 = arith.constant 0 : i32
    %c0_i32_0 = arith.constant 0 : i32
    %c0_i32_1 = arith.constant 0 : i32
    return %c0_i32, %c0_i32_0 : i32, i32
  }
  func.func @transform_16(%arg0: i32) -> (i32, i32) {
    %c0_i32 = arith.constant 0 : i32
    %c0_i32_0 = arith.constant 0 : i32
    %c0_i32_1 = arith.constant 0 : i32
    return %c0_i32, %c0_i32_0 : i32, i32
  }
  func.func @transform_17(%arg0: i32) -> (i32, i32) {
    %c0_i32 = arith.constant 0 : i32
    %c0_i32_0 = arith.constant 0 : i32
    %c0_i32_1 = arith.constant 0 : i32
    return %c0_i32, %c0_i32_0 : i32, i32
  }
  func.func @transform_18(%arg0: i32) -> (i32, i32) {
    %c0_i32 = arith.constant 0 : i32
    %c0_i32_0 = arith.constant 0 : i32
    %c0_i32_1 = arith.constant 0 : i32
    return %c0_i32, %c0_i32_0 : i32, i32
  }
  func.func @transform_19(%arg0: i32) -> (i32, i32) {
    %c0_i32 = arith.constant 0 : i32
    %c0_i32_0 = arith.constant 0 : i32
    %c0_i32_1 = arith.constant 0 : i32
    return %c0_i32, %c0_i32_0 : i32, i32
  }
  func.func @transform_20(%arg0: i32) -> (i32, i32) {
    %c0_i32 = arith.constant 0 : i32
    %c0_i32_0 = arith.constant 0 : i32
    %c0_i32_1 = arith.constant 0 : i32
    return %c0_i32, %c0_i32_0 : i32, i32
  }
  func.func @transform_21(%arg0: i32) -> (i32, i32) {
    %c0_i32 = arith.constant 0 : i32
    %c0_i32_0 = arith.constant 0 : i32
    %c0_i32_1 = arith.constant 0 : i32
    return %c0_i32, %c0_i32_0 : i32, i32
  }
  func.func @transform_22(%arg0: i32) -> (i32, i32) {
    %c0_i32 = arith.constant 0 : i32
    %c0_i32_0 = arith.constant 0 : i32
    %c0_i32_1 = arith.constant 0 : i32
    return %c0_i32, %c0_i32_0 : i32, i32
  }
  func.func @transform_23(%arg0: i32) -> (i32, i32) {
    %c0_i32 = arith.constant 0 : i32
    %c0_i32_0 = arith.constant 0 : i32
    %c0_i32_1 = arith.constant 0 : i32
    return %c0_i32, %c0_i32_0 : i32, i32
  }
  func.func @transform_24(%arg0: i32) -> (i32, i32) {
    %c0_i32 = arith.constant 0 : i32
    %c0_i32_0 = arith.constant 0 : i32
    %c0_i32_1 = arith.constant 0 : i32
    return %c0_i32, %c0_i32_0 : i32, i32
  }
  func.func @transform_25(%arg0: i32) -> (i32, i32) {
    %c0_i32 = arith.constant 0 : i32
    %c0_i32_0 = arith.constant 0 : i32
    %c0_i32_1 = arith.constant 0 : i32
    return %c0_i32, %c0_i32_0 : i32, i32
  }
  func.func @transform_26(%arg0: i32) -> (i32, i32) {
    %c0_i32 = arith.constant 0 : i32
    %c0_i32_0 = arith.constant 0 : i32
    %c0_i32_1 = arith.constant 0 : i32
    return %c0_i32, %c0_i32_0 : i32, i32
  }
  func.func @transform_27(%arg0: i32) -> (i32, i32) {
    %c0_i32 = arith.constant 0 : i32
    %c0_i32_0 = arith.constant 0 : i32
    %c0_i32_1 = arith.constant 0 : i32
    return %c0_i32, %c0_i32_0 : i32, i32
  }
  func.func @transform_28(%arg0: i32) -> (i32, i32) {
    %c0_i32 = arith.constant 0 : i32
    %c0_i32_0 = arith.constant 0 : i32
    %c0_i32_1 = arith.constant 0 : i32
    return %c0_i32, %c0_i32_0 : i32, i32
  }
  func.func @transform_29(%arg0: i32) -> (i32, i32) {
    %c0_i32 = arith.constant 0 : i32
    %c0_i32_0 = arith.constant 0 : i32
    %c0_i32_1 = arith.constant 0 : i32
    return %c0_i32, %c0_i32_0 : i32, i32
  }
  func.func @transform_30(%arg0: i32) -> (i32, i32) {
    %c0_i32 = arith.constant 0 : i32
    %c0_i32_0 = arith.constant 0 : i32
    %c0_i32_1 = arith.constant 0 : i32
    return %c0_i32, %c0_i32_0 : i32, i32
  }
  func.func @transform_31(%arg0: i32) -> (i32, i32) {
    %c0_i32 = arith.constant 0 : i32
    %c0_i32_0 = arith.constant 0 : i32
    %c0_i32_1 = arith.constant 0 : i32
    return %c0_i32, %c0_i32_0 : i32, i32
  }
  func.func @transform_32(%arg0: i32) -> (i32, i32) {
    %c0_i32 = arith.constant 0 : i32
    %c0_i32_0 = arith.constant 0 : i32
    %c0_i32_1 = arith.constant 0 : i32
    return %c0_i32, %c0_i32_0 : i32, i32
  }
  func.func @transform_33(%arg0: i32) -> (i32, i32, i32) {
    %c0_i32 = arith.constant 0 : i32
    %c0_i32_0 = arith.constant 0 : i32
    %c0_i32_1 = arith.constant 0 : i32
    return %arg0, %c0_i32, %c0_i32_0 : i32, i32, i32
  }
  func.func @transform_34(%arg0: i32) -> (i32, i32, i32) {
    %c0_i32 = arith.constant 0 : i32
    %c0_i32_0 = arith.constant 0 : i32
    %c0_i32_1 = arith.constant 0 : i32
    return %arg0, %c0_i32, %c0_i32_0 : i32, i32, i32
  }
}

</mosaic_0001>

<bundles_post_ra>
// kernel: transformer_forward.1
= control target key start
LH: loop header
LB: loop body
LE: loop exit
PB: predicated region body
PF: predicated region fallthrough
CT: control target
= control target key end

     0   :  { %s4731_s6 = smov 1   ;;  %s4732_s10 = smov 2   ;;  %s5406_s0 = inlined_call_operand.smem [shape: u32[35], index: -1, kind: input, shape index: {}] }
   0x1   :  { %s4788_s5 = sld [smem:[%s5406_s0]]   ;;  %s4733_s14 = smov 3  }
   0x2   :  { %s4793_s9 = sld [smem:[%s5406_s0 + %s4731_s6]]   ;;  %s4734_s18 = smov 4  }
   0x3   :  { %s4798_s13 = sld [smem:[%s5406_s0 + %s4732_s10]]   ;;  %s4735_s22 = smov 5  }
   0x4   :  { %s4803_s17 = sld [smem:[%s5406_s0 + %s4733_s14]]   ;;  %s4736_s26 = smov 6  }
   0x5   :  { %s4808_s21 = sld [smem:[%s5406_s0 + %s4734_s18]]   ;;  %s4737_s30 = smov 7  }
   0x6   :  { %s4813_s25 = sld [smem:[%s5406_s0 + %s4735_s22]]   ;;  %s4738_s4 = smov 8  }
   0x7   :  { %5426 = sst [smem:[#allocation5_spill]] %s4788_s5  ;;  %s4739_s10 = smov 9  }
   0x8   :  { %5427 = sst [smem:[#allocation6_spill]] %s4793_s9  ;;  %s4740_s15 = smov 10  }
   0x9   :  { %5428 = sst [smem:[#allocation7_spill]] %s4798_s13  ;;  %s4741_s20 = smov 11  }
   0xa   :  { %s4818_s29 = sld [smem:[%s5406_s0 + %s4736_s26]]   ;;  %s4742_s26 = smov 12  }
   0xb   :  { %s4823_s3 = sld [smem:[%s5406_s0 + %s4737_s30]]   ;;  %s4743_s1 = smov 13  }
   0xc   :  { %s4828_s8 = sld [smem:[%s5406_s0 + %s4738_s4]]   ;;  %s4744_s7 = smov 14  }
   0xd   :  { %s4833_s14 = sld [smem:[%s5406_s0 + %s4739_s10]]   ;;  %s4746_s22 = smov 16  }
   0xe   :  { %s4838_s19 = sld [smem:[%s5406_s0 + %s4740_s15]]   ;;  %s4745_s15 = smov 15  }
   0xf   :  { %s4843_s24 = sld [smem:[%s5406_s0 + %s4741_s20]]   ;;  %s4747_s28 = smov 17  }
  0x10   :  { %s4848_s30 = sld [smem:[%s5406_s0 + %s4742_s26]]  }
  0x11   :  { %5429 = sst [smem:[#allocation8_spill]] %s4823_s3 }
  0x12   :  { %5430 = sst [smem:[#allocation9_spill]] %s4828_s8 }
  0x13   :  { %s4853_s6 = sld [smem:[%s5406_s0 + %s4743_s1]]  }
  0x14   :  { %s4858_s12 = sld [smem:[%s5406_s0 + %s4744_s7]]   ;;  %s4748_s7 = smov 18  }
  0x15   :  { %s4863_s20 = sld [smem:[%s5406_s0 + %s4745_s15]]   ;;  %s4749_s15 = smov 19  }
  0x16   :  { %5431 = sst [smem:[#allocation10_spill]] %s4848_s30 }
  0x17   :  { %s4868_s27 = sld [smem:[%s5406_s0 + %s4746_s22]]   ;;  %s4750_s22 = smov 20  }
  0x18   :  { %s4873_s4 = sld [smem:[%s5406_s0 + %s4747_s28]]   ;;  %s4751_s28 = smov 21  }
  0x19   :  { %5432 = sst [smem:[#allocation11_spill]] %s4853_s6 }
  0x1a   :  { %5433 = sst [smem:[#allocation12_spill]] %s4858_s12 }
  0x1b   :  { %s4878_s12 = sld [smem:[%s5406_s0 + %s4748_s7]]   ;;  %s4752_s7 = smov 22  }
  0x1c   :  { %s4883_s30 = sld [smem:[%s5406_s0 + %s4749_s15]]   ;;  %s4753_s15 = smov 23  }
  0x1d   :  { %5434 = sst [smem:[#allocation13_spill]] %s4868_s27 }
  0x1e   :  { %5435 = sst [smem:[#allocation14_spill]] %s4873_s4 }
  0x1f   :  { %s4888_s27 = sld [smem:[%s5406_s0 + %s4750_s22]]   ;;  %s4754_s22 = smov 24  }
  0x20   :  { %s4893_s4 = sld [smem:[%s5406_s0 + %s4751_s28]]   ;;  %s4755_s28 = smov 25  }
  0x21   :  { %5436 = sst [smem:[#allocation15_spill]] %s4878_s12 }
  0x22   :  { %5437 = sst [smem:[#allocation16_spill]] %s4883_s30 }
  0x23   :  { %s4898_s12 = sld [smem:[%s5406_s0 + %s4752_s7]]   ;;  %s4756_s7 = smov 26  }
  0x24   :  { %s4903_s30 = sld [smem:[%s5406_s0 + %s4753_s15]]   ;;  %s4757_s15 = smov 27  }
  0x25   :  { %5438 = sst [smem:[#allocation17_spill]] %s4888_s27 }
  0x26   :  { %5439 = sst [smem:[#allocation18_spill]] %s4893_s4 }
  0x27   :  { %s4908_s27 = sld [smem:[%s5406_s0 + %s4754_s22]]   ;;  %s4758_s22 = smov 28  }
  0x28   :  { %s4913_s4 = sld [smem:[%s5406_s0 + %s4755_s28]]   ;;  %s4759_s28 = smov 29  }
  0x29   :  { %5440 = sst [smem:[#allocation19_spill]] %s4898_s12 }
  0x2a   :  { %5441 = sst [smem:[#allocation20_spill]] %s4903_s30 }
  0x2b   :  { %s4918_s12 = sld [smem:[%s5406_s0 + %s4756_s7]]   ;;  %s4760_s7 = smov 30  }
  0x2c   :  { %s4923_s30 = sld [smem:[%s5406_s0 + %s4757_s15]]   ;;  %s4761_s15 = smov 31  }
  0x2d   :  { %5442 = sst [smem:[#allocation21_spill]] %s4908_s27 }
  0x2e   :  { %5443 = sst [smem:[#allocation22_spill]] %s4913_s4 }
  0x2f   :  { %s4928_s27 = sld [smem:[%s5406_s0 + %s4758_s22]]   ;;  %s4762_s22 = smov 32  }
  0x30   :  { %s4933_s4 = sld [smem:[%s5406_s0 + %s4759_s28]]   ;;  %s4763_s28 = smov 33  }
  0x31   :  { %5444 = sst [smem:[#allocation23_spill]] %s4918_s12 }
  0x32   :  { %5445 = sst [smem:[#allocation24_spill]] %s4923_s30 }
  0x33   :  { %s4938_s12 = sld [smem:[%s5406_s0 + %s4760_s7]]   ;;  %s4764_s7 = smov 34  }
  0x34   :  { %s4943_s30 = sld [smem:[%s5406_s0 + %s4761_s15]]  }
  0x35   :  { %5446 = sst [smem:[#allocation25_spill]] %s4928_s27 }
  0x36   :  { %5447 = sst [smem:[#allocation26_spill]] %s4933_s4 }
  0x37   :  { %s4948_s27 = sld [smem:[%s5406_s0 + %s4762_s22]]  }
  0x38   :  { %s4953_s4 = sld [smem:[%s5406_s0 + %s4763_s28]]  }
  0x39   :  { %5448 = sst [smem:[#allocation27_spill]] %s4938_s12 }
  0x3a   :  { %s4958_s12 = sld [smem:[%s5406_s0 + %s4764_s7]]  }
  0x40   :  { %5449 = sst [smem:[#allocation28_spill]] %s4958_s12 }
  0x41   :  { %75 = vsyncpa [#allocation3], 0 }
  0x42   :  { %77 = vsyncpa [#allocation3 + $0x1], 0  ;;  %s4960_s15 = smov 0   ;;  %s4962_s16 = smov 0  }
  0x43   :  { %s4964_s18 = smov 0   ;;  %s4966_s22 = smov 0  }
  0x44 LB: > { %s5450_s6 = sld [smem:[#allocation11_spill]]  ;;  %s5451_s3 = sld [smem:[#allocation8_spill]]  ;;  %s4725_s18 = sphi %s4964_s18, %s5490_s18   ;;  %s4721_s16 = sphi %s4962_s16, %s5489_s16   ;;  %s4717_s15 = sphi %s4960_s15, %s5488_s15   ;;  %s4729_s22 = sphi %s4966_s22, %s5491_s22  }
  0x45   : > { %s5452_s13 = sld [smem:[#allocation7_spill]]  ;;  %s4981_s0 = sadd.s32 4294967295, %s4729_s22  }
  0x46   : > { %s4025_s23 = sadd.s32 4294967294, %s4729_s22   ;;  %s4985_s26 = sadd.s32 1, %s4729_s22  }
  0x47   : > { %s793_s28 = sadd.s32 1, %s4725_s18  ;;  %s790_s1 = ssub.s32 %s4729_s22, %s4985_s26 }
  0x48   : > { %p803_p0 = scmp.ne.s32.totalorder %s4725_s18, %s4721_s16  ;;  %p791_p1 = scmp.eq.s32.totalorder %s790_s1, 0 }
  0x49   : > { %p804_p2 = scmp.eq.s32.totalorder %s4981_s0, 1  ;;  %p809_p3 = scmp.ne.s32.totalorder %s4721_s16, %s4717_s15 }
  0x4a   : > { %p810_p4 = scmp.eq.s32.totalorder %s4025_s23, 1  ;;  %p4028_p7 = scmp.ge.s32.totalorder %s4729_s22, 1 }
  0x4b   : > { %s4996_s2 = scalar_select %p791_p1, %s4725_s18, %s793_s28  }
  0x4c   : > { %p4998_p5 = por %p804_p2, %p803_p0  ;;  %p5002_p6 = por %p810_p4, %p809_p3 }
  0x4d   : > { %p960_p8 = scmp.lt.s32.totalorder %s4729_s22, 3 }
  0x4f   : > { %p961_p9 = pnand %p4028_p7, %p960_p8 }
  0x50   : > { %s5455_s5 = sld [smem:[#allocation5_spill]] (!%p961_p9)  ;;  %v1064_v0 = vld [vmem:[%s5452_s13] sm:$0xff] (!%p961_p9)  ;;  %v1065_v1 = vld [vmem:[%s5452_s13 + $0x8] sm:$0xff] (!%p961_p9)  ;;  %p1051_p10 = scmp.lt.s32.totalorder (!%p961_p9), %s4981_s0, 1  ;;  %v4765_v2 = vmov (!%p961_p9), 0.0|0.0   ;;  %vm4766_vm0 = vmmov (!%p961_p9), 0   ;;  %v1153_v44 = vlaneseq (!%p961_p9) }
  0x51   : > { %964 = sbr.rel (%p961_p9) target bundleno = 8689 (0x21f1), region = 152  ;;  %4453 = vmatprep.subr.bf16.mxu1 (!%p961_p9), %v4765_v2  ;;  %s5456_s9 = sld [smem:[#allocation6_spill]] (!%p961_p9)  ;;  %v4454_v3 = vpack.c.bf16 (!%p961_p9), %v1065_v1, %v1064_v0  ;;  %v4767_v4 = vmov (!%p961_p9), 0.0   ;;  %vm1068_vm1 = vcmask (!%p961_p9), 130048   ;;  %v1066_v7 = vld [vmem:[%s4803_s17] sm:$0x1] (!%p961_p9) }
  0x52   : > { %4205 = vmatprep.mubr.msk.f32.mxu1 (!%p961_p9), %vm4766_vm0, %v4767_v4  ;;  %4224 = vmatprep.subr.mxu0 (!%p961_p9), %v4767_v4  ;;  %s5457_s12 = sld [smem:[#allocation28_spill]] (!%p961_p9)  ;;  %vm1148_vm2 = vcmask (!%p961_p9), 1046528   ;;  %v1067_v13 = vld [vmem:[%s4808_s21] sm:$0xff] (!%p961_p9)  ;;  %vm1150_vm3 = vcmask (!%p961_p9), 261120   ;;  %v1161_v23 = vld [vmem:[%s5451_s3 + $0x8] sm:$0xff] (!%p961_p9)  ;;  %v1162_v25 = vld [vmem:[%s5451_s3 + $0x10] sm:$0xff] (!%p961_p9) }
  0x53   : > { %4226 = vmatprep.mubr.msk.f32.mxu0 (!%p961_p9), %vm4766_vm0, %v4767_v4  ;;  %4455 = vmatpush3.bf16.msra.mxu1 (!%p961_p9), %v4454_v3  ;;  %v1160_v22 = vld [vmem:[%s5451_s3] sm:$0xff] (!%p961_p9)  ;;  %v1163_v26 = vld [vmem:[%s5451_s3 + $0x18] sm:$0xff] (!%p961_p9)  ;;  %s5458_s8 = sld [smem:[#allocation9_spill]] (!%p961_p9)  ;;  %vm1304_vm4 = vcmask (!%p961_p9), 64512   ;;  %v1154_v45 = vshrl.u32 (!%p961_p9), %v1153_v44, 7  ;;  %v1156_v46 = vand.u32 (!%p961_p9), 127, %v1153_v44 }
  0x54   : > { %4456 = vmatprep.subr.bf16.mxu1 (!%p961_p9), %v4765_v2  ;;  %v4457_v24 = vpack.c.bf16 (!%p961_p9), %v1161_v23, %v1160_v22  ;;  %v4460_v27 = vpack.c.bf16 (!%p961_p9), %v1163_v26, %v1162_v25  ;;  %v4032_v32 = vld [vmem:[%s4813_s25] ss:$0 sm:$0xff] (!%p961_p9)  ;;  %s5483_s3 = sld [smem:[#allocation21_spill]] (!%p961_p9)  ;;  %vm3881_vm6 = vcmask (!%p961_p9), 261127  }
  0x55   : > { %v4033_v34 = vld [vmem:[%s4818_s29] ss:$0 sm:$0xff] (!%p961_p9)  ;;  %vm5064_vm5 = vcmp.le.s32.totalorder (!%p961_p9), %v1156_v46, %v1154_v45  ;;  %v1167_v45 = vld [vmem:[%s4833_s14 + $0x10] sm:$0xff] (!%p961_p9) }
  0x58   : > { %s1052_s11 = scalar_select %p1051_p10, %s4981_s0, 1 }
  0x59   : > { %v4034_v37 = vld [vmem:[%s5458_s8] ss:$0 sm:$0xff] }
  0x5a   : > { %s1053_s23 = scalar_lea.vmem %s5455_s5, %s1052_s11  ;;  %s4029_s28 = sshll.u32 %s1052_s11, 3 }
  0x5b   : > { %v1062_v5 = vld [vmem:[%s1053_s23] sm:$0x1]  ;;  %s1057_s1 = scalar_lea.vmem %s5456_s9, %s4029_s28  ;;  %s1061_s13 = scalar_lea.vmem %s5457_s12, %s4029_s28 }
  0x5c   : > { %4206 = vmatmul.mubr.msk.f32.vlgmr.msra.gmra.mrb[0].mxu1 %vm1068_vm1, %v1062_v5  ;;  %v1063_v6 = vld [vmem:[%s1057_s1] sm:$0xff]  ;;  %s4769_s11 = smov 96   ;;  %s5413_s23 = smov 88  }
  0x5d   : > { %4216 = vmatprep.mubr.msk.f32.mxu1 %vm4766_vm0, %v4767_v4  ;;  %v1143_v9 = vrot.slane %v1063_v6, 1  ;;  %4458 = vmatpush3.bf16.msra.mxu1 %v4457_v24  ;;  %s5412_s28 = smov 56   ;;  %s5421_s1 = smov 64   ;;  %v1166_v6 = vld [vmem:[%s4833_s14 + $0x8] sm:$0xff] }
  0x5e   : > { %4459 = vmatprep.subr.bf16.mxu1 %v4765_v2  ;;  %s5487_s5 = sld [smem:[#allocation27_spill]] }
  0x61   : > { %4461 = vmatpush3.bf16.msra.mxu1 %v4460_v27 }
  0x62   : > { %4219 = vmatprep.subr.mxu1 %v4767_v4 }
 0x12f   : > { %v1138_v8 = vpop.f32.mrb[0].mxu1 }
 0x130   : > { %v1139_v10 = vadd.f32 %v1138_v8, %v1066_v7  ;;  %v4207_v11 = vpop.f32.mrb[1].mxu1 }
 0x132   : > { %v1146_v12 = vrot.slane %v1139_v10, 1 }
 0x134   : > { %v1149_v14 = vsel %vm1148_vm2, %v1143_v9, %v1146_v12 }
 0x135   : > { %v5026_v15 = vadd.f32 %v1149_v14, %v1067_v13  ;;  %1151 = vst.msk [vmem:[%s1061_s13] sm:$0xff] %vm1150_vm3, %v1149_v14  ;;  %s5416_s13 = smov 120  }
 0x137   : > { %v1194_v16 = vsel %vm1150_vm3, %v5026_v15, 0.0 }
 0x138   : > { %1195 = vadd.xlane.f32.xlu0 %v1194_v16  ;;  %v1165_v16 = vld [vmem:[%s4833_s14] sm:$0xff] }
 0x1c5   : > { %v1196_v17 = vpop.xlane.xlu0 %1195 }
 0x1c6   : > { %v1198_v18 = vmul.f32 0.03125, %v1196_v17 }
 0x1c8   : > { %v1199_v19 = vsub.f32 %v5026_v15, %v1198_v18 }
 0x1ca   : > { %v1200_v20 = vmul.f32 %v1199_v19, %v1199_v19 }
 0x1cc   : > { %v1201_v21 = vsel %vm1150_vm3, %v1200_v20, 0.0 }
 0x1cd   : > { %1202 = vadd.xlane.f32.xlu0 %v1201_v21 }
 0x25a   : > { %v1203_v28 = vpop.xlane.xlu0 %1202 }
 0x25b   : > { %v1204_v29 = vmul.f32 0.03125, %v1203_v28 }
 0x25d   : > { %v1205_v30 = vadd.f32 1e-05, %v1204_v29 }
 0x25f   : > { %4621 = vrsqrt.f32 %v1205_v30 }
 0x269   : > { %v4622_v31 = vpop.eup %4621 }
 0x26a   : > { %v1207_v33 = vmul.f32 %v4622_v31, %v1199_v19 }
 0x26c   : > { %v1214_v35 = vmul.f32 %v4032_v32, %v1207_v33 }
 0x26e   : > { %v1221_v36 = vadd.f32 %v4033_v34, %v1214_v35 }
 0x270   : > { %4217 = vmatmul.mubr.msk.f32.vlgmr.msra.gmra.mrb[2].mxu1 %vm1150_vm3, %v1221_v36 }
 0x271   : > { %4221 = vmatprep.mubr.msk.f32.mxu1 %vm4766_vm0, %v4767_v4 }
 0x343   : > { %v1297_v38 = vpop.f32.mrb[2].mxu1 }
 0x344   : > { %v5045_v39 = vadd.f32 %v4034_v37, %v1297_v38  ;;  %v4218_v40 = vpop.f32.mrb[3].mxu1 }
 0x346   : > { %1468 = vrot.lane.b32.xlu0 %v5045_v39, %s5416_s13  ;;  %1302 = vrot.lane.b32.xlu1 %v5045_v39, %s4769_s11  ;;  %s5417_s13 = smov 72  }
 0x34a   : > { %1470 = vrot.lane.b32.xlu1 %v5045_v39, %s5413_s23  ;;  %s5415_s23 = smov 112  }
 0x3b8   : > { %v1303_v41 = vpop.permute.xlu1 %1302  ;;  %v1469_v43 = vpop.permute.xlu0 %1468 }
 0x3b9   : > { %4220 = vmatpush3.xpose.msk.msra.mxu1 %vm1304_vm4, %v1303_v41 }
 0x3ba   : > { %4229 = vmatprep.subr.mxu1 %v4767_v4 }
 0x3bc   : > { %4222 = vmatmul.mubr.msk.f32.vlgmr.msra.gmra.mrb[4].mxu1 %vm1304_vm4, %v5045_v39  ;;  %v1471_v42 = vpop.permute.xlu1 %1470 }
 0x3bd   : > { %4230 = vmatpush3.xpose.msk.msra.mxu1 %vm1304_vm4, %v1471_v42  ;;  %4231 = vmatprep.mubr.msk.f32.mxu1 %vm4766_vm0, %v4767_v4 }
 0x3be   : > { %4239 = vmatprep.subr.mxu1 %v4767_v4 }
 0x3c0   : > { %4232 = vmatmul.mubr.msk.f32.vlgmr.msra.gmra.mrb[6].mxu1 %vm1304_vm4, %v1469_v43 }
 0x3c1   : > { %4241 = vmatprep.mubr.msk.f32.mxu1 %vm4766_vm0, %v4767_v4  ;;  %4240 = vmatpush3.msra.mxu1 %v1166_v6 }
 0x3c2   : > { %4249 = vmatprep.subr.mxu1 %v4767_v4 }
 0x48f   : > { %v1375_v47 = vpop.f32.mrb[4].mxu1 }
 0x490   : > { %v1379_v49 = vmul.f32 0.35355338, %v1375_v47  ;;  %v4223_v50 = vpop.f32.mrb[5].mxu1 }
 0x492   : > { %v1380_v51 = vsel %vm5064_vm5, %v1379_v49, -1e+30 }
 0x493   : > { %v1542_v52 = vpop.f32.mrb[6].mxu1  ;;  %v1381_v53 = vsel %vm1304_vm4, %v1380_v51, -inf }
 0x494   : > { %v1546_v54 = vmul.f32 0.35355338, %v1542_v52  ;;  %1382 = vmax.xlane.f32.xlu1 %v1381_v53  ;;  %v4233_v55 = vpop.f32.mrb[7].mxu1 }
 0x496   : > { %v1547_v56 = vsel %vm5064_vm5, %v1546_v54, -1e+30 }
 0x497   : > { %v1548_v57 = vsel %vm1304_vm4, %v1547_v56, -inf }
 0x498   : > { %1549 = vmax.xlane.f32.xlu0 %v1548_v57 }
 0x4ae   : > { %1559 = vrot.lane.b32.xlu0 %v5045_v39, %s5412_s28  ;;  %s5414_s28 = smov 80  }
 0x521   : > { %v1383_v58 = vpop.xlane.xlu1 %1382 }
 0x522   : > { %v1384_v59 = vsub.f32 %v1380_v51, %v1383_v58 }
 0x524   : > { %v1385_v60 = vmul.f32 1.442695, %v1384_v59  ;;  %v1168_v59 = vld [vmem:[%s4833_s14 + $0x18] sm:$0xff] }
 0x525   : > { %v1550_v61 = vpop.xlane.xlu0 %1549 }
 0x526   : > { %4623 = vpow2.f32 %v1385_v60  ;;  %v1551_v62 = vsub.f32 %v1547_v56, %v1550_v61 }
 0x528   : > { %v1552_v63 = vmul.f32 1.442695, %v1551_v62 }
 0x529   : > { %v1560_v12 = vpop.permute.xlu0 %1559 }
 0x52a   : > { %4625 = vpow2.f32 %v1552_v63 }
 0x530   : > { %v4624_v0 = vpop.eup %4623 }
 0x531   : > { %v1387_v1 = vsel %vm1304_vm4, %v4624_v0, 0.0 }
 0x532   : > { %1388 = vadd.xlane.f32.xlu1 %v1387_v1 }
 0x534   : > { %v4626_v3 = vpop.eup %4625 }
 0x535   : > { %v1554_v5 = vsel %vm1304_vm4, %v4626_v3, 0.0 }
 0x536   : > { %1555 = vadd.xlane.f32.xlu1 %v1554_v5 }
 0x547   : > { %1392 = vrot.lane.b32.xlu1 %v5045_v39, %s5421_s1  ;;  %s5467_s1 = sld [smem:[#allocation17_spill]] }
 0x54b   : > { %1783 = vrot.lane.b32.xlu1 %v5045_v39, %s5414_s28  ;;  %s5420_s28 = smov 48  }
 0x54f   : > { %1781 = vrot.lane.b32.xlu1 %v5045_v39, %s5415_s23  ;;  %s5419_s23 = smov 104  }
 0x5bf   : > { %v1389_v7 = vpop.xlane.xlu1 %1388 }
 0x5c0   : > { %4627 = vrcp.f32 %v1389_v7 }
 0x5c3   : > { %v1556_v8 = vpop.xlane.xlu1 %1555 }
 0x5c4   : > { %4629 = vrcp.f32 %v1556_v8 }
 0x5c7   : > { %v1393_v9 = vpop.permute.xlu1 %1392 }
 0x5c8   : > { %4225 = vmatpush3.msra.mxu0 %v1393_v9  ;;  %v4052_v9 = vld [vmem:[%s4838_s19] ss:$0 sm:$0xff] }
 0x5c9   : > { %4234 = vmatprep.subr.mxu0 %v4767_v4 }
 0x5ca   : > { %v4628_v10 = vpop.eup %4627 }
 0x5cb   : > { %v1391_v11 = vmul.f32 %v4628_v10, %v4624_v0  ;;  %v1784_v19 = vpop.permute.xlu1 %1783 }
 0x5cd   : > { %4227 = vmatmul.mubr.msk.f32.vlgmr.msra.gmra.mrb[0].mxu0 %vm1304_vm4, %v1391_v11 }
 0x5ce   : > { %v4630_v13 = vpop.eup %4629  ;;  %4235 = vmatpush3.msra.mxu0 %v1560_v12  ;;  %4236 = vmatprep.mubr.msk.f32.mxu0 %vm4766_vm0, %v4767_v4 }
 0x5cf   : > { %v1558_v14 = vmul.f32 %v4630_v13, %v4626_v3  ;;  %4244 = vmatprep.subr.mxu0 %v4767_v4  ;;  %v1782_v22 = vpop.permute.xlu1 %1781 }
 0x5d1   : > { %4237 = vmatmul.mubr.msk.f32.vlgmr.msra.gmra.mrb[2].mxu0 %vm1304_vm4, %v1558_v14 }
 0x5d2   : > { %4246 = vmatprep.mubr.msk.f32.mxu0 %vm4766_vm0, %v4767_v4  ;;  %4245 = vmatpush3.msra.mxu0 %v1165_v16 }
 0x5d3   : > { %4254 = vmatprep.subr.mxu0 %v4767_v4 }
 0x6a0   : > { %v1464_v17 = vpop.f32.mrb[0].mxu0 }
 0x6a1   : > { %v4228_v18 = vpop.f32.mrb[1].mxu0  ;;  %4247 = vmatmul.mubr.msk.f32.vlgmr.msra.gmra.mrb[4].mxu0 %vm1304_vm4, %v1464_v17 }
 0x6a2   : > { %4256 = vmatprep.mubr.msk.f32.mxu0 %vm4766_vm0, %v4767_v4 }
 0x6a4   : > { %v1631_v20 = vpop.f32.mrb[2].mxu0 }
 0x6a5   : > { %v4238_v21 = vpop.f32.mrb[3].mxu0  ;;  %4242 = vmatmul.mubr.msk.f32.vlgmr.msra.gmra.mrb[8].mxu1 %vm1304_vm4, %v1631_v20  ;;  %v1173_v20 = vld [vmem:[%s5450_s6 + $0x8] sm:$0xff] }
 0x6a6   : > { %4250 = vmatpush3.xpose.msk.msra.mxu1 %vm1304_vm4, %v1784_v19  ;;  %4251 = vmatprep.mubr.msk.f32.mxu1 %vm4766_vm0, %v4767_v4  ;;  %v1172_v19 = vld [vmem:[%s5450_s6] sm:$0xff] }
 0x6a7   : > { %4259 = vmatprep.subr.mxu1 %v4767_v4  ;;  %v4463_v21 = vpack.c.bf16 %v1173_v20, %v1172_v19 }
 0x6a9   : > { %4252 = vmatmul.mubr.msk.f32.vlgmr.msra.gmra.mrb[10].mxu1 %vm1304_vm4, %v1782_v22  ;;  %v1175_v22 = vld [vmem:[%s5450_s6 + $0x18] sm:$0xff] }
 0x6aa   : > { %4261 = vmatprep.mubr.msk.f32.mxu1 %vm4766_vm0, %v4767_v4  ;;  %4260 = vmatpush3.msra.mxu1 %v1167_v45 }
 0x6ab   : > { %4269 = vmatprep.subr.mxu1 %v4767_v4 }
 0x774   : > { %v1777_v23 = vpop.f32.mrb[4].mxu0 }
 0x775   : > { %v4248_v24 = vpop.f32.mrb[5].mxu0 }
 0x776   : > { %v1177_v24 = vld [vmem:[%s4863_s20] sm:$0xff] }
 0x778   : > { %v1704_v25 = vpop.f32.mrb[8].mxu1 }
 0x779   : > { %v1778_v26 = vadd.f32 %v1777_v23, %v1704_v25  ;;  %v4243_v27 = vpop.f32.mrb[9].mxu1  ;;  %v1178_v25 = vld [vmem:[%s4863_s20 + $0x8] sm:$0xff] }
 0x77c   : > { %v1855_v28 = vpop.f32.mrb[10].mxu1 }
 0x77d   : > { %v1859_v29 = vmul.f32 0.35355338, %v1855_v28  ;;  %v4253_v30 = vpop.f32.mrb[11].mxu1 }
 0x77f   : > { %v1860_v31 = vsel %vm5064_vm5, %v1859_v29, -1e+30 }
 0x780   : > { %v1861_v32 = vsel %vm1304_vm4, %v1860_v31, -inf }
 0x781   : > { %1862 = vmax.xlane.f32.xlu1 %v1861_v32 }
 0x792   : > { %1872 = vrot.lane.b32.xlu1 %v5045_v39, %s5420_s28  ;;  %s5464_s28 = sld [smem:[#allocation16_spill]] }
 0x796   : > { %2022 = vrot.lane.b32.xlu1 %v5045_v39, %s5419_s23  ;;  %s5463_s23 = sld [smem:[#allocation13_spill]] }
 0x80e   : > { %v1863_v33 = vpop.xlane.xlu1 %1862 }
 0x80f   : > { %v1864_v34 = vsub.f32 %v1860_v31, %v1863_v33  ;;  %v4053_v31 = vld [vmem:[%s4843_s24] ss:$0 sm:$0xff] }
 0x811   : > { %v1865_v35 = vmul.f32 1.442695, %v1864_v34 }
 0x812   : > { %v1873_v36 = vpop.permute.xlu1 %1872 }
 0x813   : > { %4631 = vpow2.f32 %v1865_v35  ;;  %4255 = vmatpush3.msra.mxu0 %v1873_v36  ;;  %v1179_v36 = vld [vmem:[%s4863_s20 + $0x10] sm:$0xff] }
 0x814   : > { %4264 = vmatprep.subr.mxu0 %v4767_v4 }
 0x816   : > { %v2023_v44 = vpop.permute.xlu1 %2022 }
 0x81d   : > { %v4632_v37 = vpop.eup %4631 }
 0x81e   : > { %v1867_v38 = vsel %vm1304_vm4, %v4632_v37, 0.0 }
 0x81f   : > { %1868 = vadd.xlane.f32.xlu0 %v1867_v38 }
 0x835   : > { %2024 = vrot.lane.b32.xlu0 %v5045_v39, %s5417_s13  ;;  %s5418_s13 = smov 40  }
 0x8ac   : > { %v1869_v40 = vpop.xlane.xlu0 %1868 }
 0x8ad   : > { %4633 = vrcp.f32 %v1869_v40  ;;  %v1181_v40 = vld [vmem:[%s4863_s20 + $0x20] sm:$0xff] }
 0x8b0   : > { %v2025_v43 = vpop.permute.xlu0 %2024 }
 0x8b7   : > { %v4634_v41 = vpop.eup %4633 }
 0x8b8   : > { %v1871_v42 = vmul.f32 %v4634_v41, %v4632_v37  ;;  %v1180_v37 = vld [vmem:[%s4863_s20 + $0x18] sm:$0xff]  ;;  %v1182_v41 = vld [vmem:[%s4863_s20 + $0x28] sm:$0xff] }
 0x8b9   : > { %v4472_v38 = vpack.c.bf16 %v1180_v37, %v1179_v36 }
 0x8ba   : > { %4257 = vmatmul.mubr.msk.f32.vlgmr.msra.gmra.mrb[6].mxu0 %vm1304_vm4, %v1871_v42  ;;  %v4475_v42 = vpack.c.bf16 %v1182_v41, %v1181_v40 }
 0x8bb   : > { %4265 = vmatpush3.xpose.msk.msra.mxu0 %vm1304_vm4, %v2025_v43  ;;  %4266 = vmatprep.mubr.msk.f32.mxu0 %vm4766_vm0, %v4767_v4  ;;  %v1183_v43 = vld [vmem:[%s4863_s20 + $0x30] sm:$0xff] }
 0x8bc   : > { %4274 = vmatprep.subr.mxu0 %v4767_v4 }
 0x8be   : > { %4267 = vmatmul.mubr.msk.f32.vlgmr.msra.gmra.mrb[8].mxu0 %vm1304_vm4, %v2023_v44  ;;  %v1184_v44 = vld [vmem:[%s4863_s20 + $0x38] sm:$0xff] }
 0x8bf   : > { %4276 = vmatprep.mubr.msk.f32.mxu0 %vm4766_vm0, %v4767_v4  ;;  %4275 = vmatpush3.msra.mxu0 %v1168_v59  ;;  %v4478_v45 = vpack.c.bf16 %v1184_v44, %v1183_v43 }
 0x8c0   : > { %4468 = vmatprep.subr.bf16.mxu0 %v4765_v2 }
 0x98d   : > { %v1944_v46 = vpop.f32.mrb[6].mxu0 }
 0x98e   : > { %v4258_v47 = vpop.f32.mrb[7].mxu0  ;;  %4262 = vmatmul.mubr.msk.f32.vlgmr.msra.gmra.mrb[12].mxu1 %vm1304_vm4, %v1944_v46  ;;  %v1185_v46 = vld [vmem:[%s4863_s20 + $0x40] sm:$0xff] }
 0x98f   : > { %4271 = vmatprep.mubr.msk.f32.mxu1 %vm4766_vm0, %v4767_v4  ;;  %v1186_v47 = vld [vmem:[%s4863_s20 + $0x48] sm:$0xff] }
 0x991   : > { %v2096_v49 = vpop.f32.mrb[8].mxu0 }
 0x992   : > { %v2100_v50 = vmul.f32 0.35355338, %v2096_v49  ;;  %v4268_v51 = vpop.f32.mrb[9].mxu0  ;;  %v4481_v49 = vpack.c.bf16 %v1186_v47, %v1185_v46 }
 0x993   : > { %v1188_v51 = vld [vmem:[%s4863_s20 + $0x58] sm:$0xff] }
 0x994   : > { %v2101_v52 = vsel %vm5064_vm5, %v2100_v50, -1e+30  ;;  %v1187_v50 = vld [vmem:[%s4863_s20 + $0x50] sm:$0xff] }
 0x995   : > { %v2102_v53 = vsel %vm1304_vm4, %v2101_v52, -inf }
 0x996   : > { %2103 = vmax.xlane.f32.xlu1 %v2102_v53  ;;  %v1189_v53 = vld [vmem:[%s4863_s20 + $0x60] sm:$0xff] }
 0xa23   : > { %v2104_v54 = vpop.xlane.xlu1 %2103 }
 0xa24   : > { %v2105_v55 = vsub.f32 %v2101_v52, %v2104_v54  ;;  %v4484_v52 = vpack.c.bf16 %v1188_v51, %v1187_v50  ;;  %v1190_v54 = vld [vmem:[%s4863_s20 + $0x68] sm:$0xff] }
 0xa26   : > { %v2106_v56 = vmul.f32 1.442695, %v2105_v55  ;;  %v4487_v55 = vpack.c.bf16 %v1190_v54, %v1189_v53 }
 0xa28   : > { %4635 = vpow2.f32 %v2106_v56  ;;  %v1191_v56 = vld [vmem:[%s4863_s20 + $0x70] sm:$0xff] }
 0xa32   : > { %v4636_v57 = vpop.eup %4635 }
 0xa33   : > { %v2108_v58 = vsel %vm1304_vm4, %v4636_v57, 0.0 }
 0xa34   : > { %2109 = vadd.xlane.f32.xlu0 %v2108_v58 }
 0xa4a   : > { %2113 = vrot.lane.b32.xlu0 %v5045_v39, %s5418_s13  ;;  %s5461_s13 = sld [smem:[#allocation10_spill]] }
 0xa50   : > { %v4054_v33 = vld [vmem:[%s5461_s13] ss:$0 sm:$0xff]  ;;  %s5462_s13 = sld [smem:[#allocation12_spill]] }
 0xa56   : > { %v4055_v59 = vld [vmem:[%s5462_s13] ss:$0 sm:$0xff]  ;;  %s5466_s13 = sld [smem:[#allocation15_spill]] }
 0xa61   : > { %v2017_v60 = vpop.f32.mrb[12].mxu1 }
 0xa62   : > { %v2021_v61 = vadd.f32 %v2017_v60, %v1778_v26  ;;  %v4263_v62 = vpop.f32.mrb[13].mxu1  ;;  %v4469_v26 = vpack.c.bf16 %v1178_v25, %v1177_v24  ;;  %v2469_v24 = vld [vmem:[%s5464_s28 + $0x18] sm:$0xff] }
 0xac1   : > { %v2110_v63 = vpop.xlane.xlu0 %2109 }
 0xac2   : > { %4637 = vrcp.f32 %v2110_v63 }
 0xac5   : > { %v2114_v0 = vpop.permute.xlu0 %2113 }
 0xac6   : > { %4270 = vmatpush3.msra.mxu1 %v2114_v0 }
 0xac7   : > { %4462 = vmatprep.subr.bf16.mxu1 %v4765_v2 }
 0xacc   : > { %v4638_v1 = vpop.eup %4637 }
 0xacd   : > { %v2112_v3 = vmul.f32 %v4638_v1, %v4636_v57  ;;  %v1192_v57 = vld [vmem:[%s4863_s20 + $0x78] sm:$0xff] }
 0xace   : > { %v4490_v58 = vpack.c.bf16 %v1192_v57, %v1191_v56 }
 0xacf   : > { %4272 = vmatmul.mubr.msk.f32.vlgmr.msra.gmra.mrb[14].mxu1 %vm1304_vm4, %v2112_v3 }
 0xad0   : > { %4287 = vmatprep.mubr.msk.f32.mxu1 %vm4766_vm0, %v4767_v4  ;;  %4464 = vmatpush3.bf16.msra.mxu1 %v4463_v21 }
 0xad1   : > { %4465 = vmatprep.subr.bf16.mxu1 %v4765_v2 }
 0xba2   : > { %v2185_v39 = vpop.f32.mrb[14].mxu1 }
 0xba3   : > { %v4273_v5 = vpop.f32.mrb[15].mxu1  ;;  %4277 = vmatmul.mubr.msk.f32.vlgmr.msra.gmra.mrb[10].mxu0 %vm1304_vm4, %v2185_v39 }
 0xba4   : > { %4322 = vmatprep.mubr.msk.f32.mxu0 %vm4766_vm0, %v4767_v4  ;;  %4470 = vmatpush3.bf16.msra.mxu0 %v4469_v26 }
 0xba5   : > { %4471 = vmatprep.subr.bf16.mxu0 %v4765_v2 }
 0xba8   : > { %4473 = vmatpush3.bf16.msra.mxu0 %v4472_v38 }
 0xba9   : > { %4474 = vmatprep.subr.bf16.mxu0 %v4765_v2 }
 0xbac   : > { %4476 = vmatpush3.bf16.msra.mxu0 %v4475_v42 }
 0xbad   : > { %4477 = vmatprep.subr.bf16.mxu0 %v4765_v2 }
 0xbb0   : > { %4479 = vmatpush3.bf16.msra.mxu0 %v4478_v45 }
 0xbb1   : > { %4480 = vmatprep.subr.bf16.mxu0 %v4765_v2 }
 0xbb4   : > { %4482 = vmatpush3.bf16.msra.mxu0 %v4481_v49 }
 0xbb5   : > { %4483 = vmatprep.subr.bf16.mxu0 %v4765_v2 }
 0xbb8   : > { %4485 = vmatpush3.bf16.msra.mxu0 %v4484_v52 }
 0xbb9   : > { %4486 = vmatprep.subr.bf16.mxu0 %v4765_v2 }
 0xbbc   : > { %4488 = vmatpush3.bf16.msra.mxu0 %v4487_v55 }
 0xbbd   : > { %4489 = vmatprep.subr.bf16.mxu0 %v4765_v2 }
 0xbc0   : > { %4491 = vmatpush3.bf16.msra.mxu0 %v4490_v58 }
 0xbc1   : > { %4361 = vmatprep.subr.mxu0 %v4767_v4 }
 0xc76   : > { %v2258_v6 = vpop.f32.mrb[10].mxu0 }
 0xc77   : > { %v2262_v7 = vadd.f32 %v2258_v6, %v2021_v61  ;;  %v4278_v8 = vpop.f32.mrb[11].mxu0 }
 0xc79   : > { %v2263_v10 = vadd.f32 %v2262_v7, %v5026_v15  ;;  %v1174_v15 = vld [vmem:[%s5450_s6 + $0x10] sm:$0xff]  ;;  %s4088_s6 = sshll.u32 %s4981_s0, 4  ;;  %s4779_s0 = smov [#allocation2]  }
 0xc7a   : > { %v4466_v23 = vpack.c.bf16 %v1175_v22, %v1174_v15  ;;  %v2466_v15 = vld [vmem:[%s5464_s28] sm:$0xff]  ;;  %v2467_v22 = vld [vmem:[%s5464_s28 + $0x8] sm:$0xff]  ;;  %s4671_s12 = sshll.u32 %s4779_s0, 4  ;;  %s4672_s12 = int_to_ptr.vmem [resolvable:$false] %s4671_s12 }
 0xc7b   : > { %v5148_v11 = vadd.f32 %v4052_v9, %v2263_v10  ;;  %v4057_v9 = vld [vmem:[%s5463_s23] ss:$0 sm:$0xff]  ;;  %s5465_s23 = sld [smem:[#allocation14_spill]] }
 0xc7c   : > { %4467 = vmatpush3.bf16.msra.mxu1 %v4466_v23  ;;  %v2468_v23 = vld [vmem:[%s5464_s28 + $0x10] sm:$0xff] }
 0xc7d   : > { %v2271_v12 = vsel %vm1150_vm3, %v5148_v11, 0.0  ;;  %4492 = vmatprep.subr.bf16.mxu1 %v4765_v2  ;;  %v4496_v25 = vpack.c.bf16 %v2469_v24, %v2468_v23 }
 0xc7e   : > { %2272 = vadd.xlane.f32.xlu1 %v2271_v12 }
 0xd0b   : > { %v2273_v13 = vpop.xlane.xlu1 %2272 }
 0xd0c   : > { %v2274_v14 = vmul.f32 0.03125, %v2273_v13 }
 0xd0e   : > { %v2275_v16 = vsub.f32 %v5148_v11, %v2274_v14 }
 0xd10   : > { %v2276_v17 = vmul.f32 %v2275_v16, %v2275_v16 }
 0xd12   : > { %v2277_v18 = vsel %vm1150_vm3, %v2276_v17, 0.0 }
 0xd13   : > { %2278 = vadd.xlane.f32.xlu1 %v2277_v18 }
 0xda0   : > { %v2279_v27 = vpop.xlane.xlu1 %2278 }
 0xda1   : > { %v2280_v28 = vmul.f32 0.03125, %v2279_v27 }
 0xda3   : > { %v2281_v29 = vadd.f32 1e-05, %v2280_v28 }
 0xda5   : > { %4639 = vrsqrt.f32 %v2281_v29 }
 0xdaf   : > { %v4640_v30 = vpop.eup %4639 }
 0xdb0   : > { %v2283_v32 = vmul.f32 %v4640_v30, %v2275_v16  ;;  %v4058_v30 = vld [vmem:[%s5465_s23] ss:$0 sm:$0xff]  ;;  %s5470_s23 = sld [smem:[#allocation18_spill]] }
 0xdb2   : > { %v2290_v34 = vmul.f32 %v4053_v31, %v2283_v32  ;;  %v4059_v32 = vld [vmem:[%s5466_s13] ss:$0 sm:$0xff]  ;;  %s5471_s13 = smov 88  }
 0xdb4   : > { %v2297_v35 = vadd.f32 %v4054_v33, %v2290_v34 }
 0xdb6   : > { %4288 = vmatmul.mubr.msk.f32.vlgmr.msra.gmra.mrb[16].mxu1 %vm1150_vm3, %v2297_v35  ;;  %v4060_v35 = vld [vmem:[%s5467_s1] ss:$0 sm:$0xff]  ;;  %s5469_s1 = smov 120   ;;  %v2474_v48 = vld [vmem:[%s5470_s23 + $0x18] sm:$0xff] }
 0xdb7   : > { %4333 = vmatprep.mubr.msk.f32.mxu1 %vm4766_vm0, %v4767_v4  ;;  %v2471_v58 = vld [vmem:[%s5470_s23] sm:$0xff] }
 0xe89   : > { %v2373_v60 = vpop.f32.mrb[16].mxu1 }
 0xe8a   : > { %v2374_v61 = vadd.f32 %v4055_v59, %v2373_v60  ;;  %v4289_v62 = vpop.f32.mrb[17].mxu1 }
 0xe8c   : > { %v2378_v63 = vmul.f32 0.044715, %v2374_v61  ;;  %v2377_v6 = vmul.f32 0.5, %v2374_v61 }
 0xe8e   : > { %v2379_v0 = vmul.f32 %v2378_v63, %v2374_v61 }
 0xe90   : > { %v2380_v1 = vmul.f32 %v2379_v0, %v2374_v61 }
 0xe92   : > { %v2381_v3 = vadd.f32 %v2380_v1, %v2374_v61 }
 0xe94   : > { %v2382_v39 = vmul.f32 0.7978846, %v2381_v3 }
 0xe96   : > { %4641 = vtanh.f32 %v2382_v39 }
 0xea0   : > { %v4642_v5 = vpop.eup %4641 }
 0xea1   : > { %v2384_v7 = vadd.f32 1.0, %v4642_v5 }
 0xea3   : > { %v2385_v8 = vmul.f32 %v2384_v7, %v2377_v6 }
 0xea5   : > { %4323 = vmatmul.mubr.f32.vlgmr.msra.gmra.mrb[12].mxu0 %v2385_v8 }
 0xea6   : > { %4363 = vmatprep.mubr.msk.f32.mxu0 %vm4766_vm0, %v4767_v4  ;;  %4362 = vmatpush3.msra.mxu0 %v2471_v58 }
 0xea7   : > { %4371 = vmatprep.subr.mxu0 %v4767_v4 }
 0xf78   : > { %v2452_v10 = vpop.f32.mrb[12].mxu0 }
 0xf79   : > { %v2456_v12 = vadd.f32 %v2452_v10, %v5148_v11  ;;  %v4324_v13 = vpop.f32.mrb[13].mxu0  ;;  %v4493_v11 = vpack.c.bf16 %v2467_v22, %v2466_v15 }
 0xf7b   : > { %v5194_v14 = vadd.f32 %v4057_v9, %v2456_v12  ;;  %4494 = vmatpush3.bf16.msra.mxu1 %v4493_v11 }
 0xf7c   : > { %4495 = vmatprep.subr.bf16.mxu1 %v4765_v2 }
 0xf7d   : > { %v2500_v16 = vsel %vm1150_vm3, %v5194_v14, 0.0 }
 0xf7e   : > { %2501 = vadd.xlane.f32.xlu1 %v2500_v16 }
 0xf7f   : > { %4497 = vmatpush3.bf16.msra.mxu1 %v4496_v25 }
 0xf80   : > { %4336 = vmatprep.subr.mxu1 %v4767_v4 }
0x100b   : > { %v2502_v17 = vpop.xlane.xlu1 %2501 }
0x100c   : > { %v2503_v18 = vmul.f32 0.03125, %v2502_v17  ;;  %v2472_v17 = vld [vmem:[%s5470_s23 + $0x8] sm:$0xff] }
0x100e   : > { %v2504_v19 = vsub.f32 %v5194_v14, %v2503_v18 }
0x1010   : > { %v2505_v20 = vmul.f32 %v2504_v19, %v2504_v19 }
0x1012   : > { %v2506_v21 = vsel %vm1150_vm3, %v2505_v20, 0.0 }
0x1013   : > { %2507 = vadd.xlane.f32.xlu1 %v2506_v21 }
0x10a0   : > { %v2508_v26 = vpop.xlane.xlu1 %2507 }
0x10a1   : > { %v2509_v27 = vmul.f32 0.03125, %v2508_v26 }
0x10a3   : > { %v2510_v28 = vadd.f32 1e-05, %v2509_v27 }
0x10a5   : > { %4643 = vrsqrt.f32 %v2510_v28 }
0x10af   : > { %v4644_v29 = vpop.eup %4643 }
0x10b0   : > { %v2512_v31 = vmul.f32 %v4644_v29, %v2504_v19 }
0x10b2   : > { %v2519_v33 = vmul.f32 %v4058_v30, %v2512_v31 }
0x10b4   : > { %v2526_v34 = vadd.f32 %v4059_v32, %v2519_v33 }
0x10b6   : > { %4334 = vmatmul.mubr.msk.f32.vlgmr.msra.gmra.mrb[18].mxu1 %vm1150_vm3, %v2526_v34 }
0x10b7   : > { %4338 = vmatprep.mubr.msk.f32.mxu1 %vm4766_vm0, %v4767_v4 }
0x1189   : > { %v2602_v36 = vpop.f32.mrb[18].mxu1 }
0x118a   : > { %v5212_v37 = vadd.f32 %v4060_v35, %v2602_v36  ;;  %v4335_v38 = vpop.f32.mrb[19].mxu1 }
0x118c   : > { %2607 = vrot.lane.b32.xlu1 %v5212_v37, %s4769_s11  ;;  %s5468_s11 = smov 64  }
0x11fe   : > { %v2608_v40 = vpop.permute.xlu1 %2607 }
0x11ff   : > { %4337 = vmatpush3.xpose.msk.msra.mxu1 %vm1304_vm4, %v2608_v40 }
0x1200   : > { %4341 = vmatprep.subr.mxu1 %v4767_v4 }
0x1202   : > { %4339 = vmatmul.mubr.msk.f32.vlgmr.msra.gmra.mrb[20].mxu1 %vm1304_vm4, %v5212_v37 }
0x1203   : > { %4343 = vmatprep.mubr.msk.f32.mxu1 %vm4766_vm0, %v4767_v4 }
0x12d5   : > { %v2679_v41 = vpop.f32.mrb[20].mxu1 }
0x12d6   : > { %v2683_v42 = vmul.f32 0.35355338, %v2679_v41  ;;  %v4340_v43 = vpop.f32.mrb[21].mxu1  ;;  %v2473_v41 = vld [vmem:[%s5470_s23 + $0x10] sm:$0xff] }
0x12d8   : > { %v2684_v44 = vsel %vm5064_vm5, %v2683_v42, -1e+30 }
0x12d9   : > { %v2685_v45 = vsel %vm1304_vm4, %v2684_v44, -inf }
0x12da   : > { %2686 = vmax.xlane.f32.xlu0 %v2685_v45 }
0x12f0   : > { %2696 = vrot.lane.b32.xlu0 %v5212_v37, %s5468_s11  ;;  %s5472_s11 = smov 56  }
0x12f4   : > { %2772 = vrot.lane.b32.xlu0 %v5212_v37, %s5469_s1  ;;  %s5473_s1 = smov 112  }
0x1367   : > { %v2687_v46 = vpop.xlane.xlu0 %2686 }
0x1368   : > { %v2688_v47 = vsub.f32 %v2684_v44, %v2687_v46 }
0x136a   : > { %v2689_v49 = vmul.f32 1.442695, %v2688_v47 }
0x136b   : > { %v2697_v50 = vpop.permute.xlu0 %2696 }
0x136c   : > { %4645 = vpow2.f32 %v2689_v49  ;;  %4342 = vmatpush3.msra.mxu1 %v2697_v50 }
0x136d   : > { %4346 = vmatprep.subr.mxu1 %v4767_v4 }
0x136f   : > { %v2773_v57 = vpop.permute.xlu0 %2772 }
0x1376   : > { %v4646_v51 = vpop.eup %4645 }
0x1377   : > { %v2691_v52 = vsel %vm1304_vm4, %v4646_v51, 0.0 }
0x1378   : > { %2692 = vadd.xlane.f32.xlu1 %v2691_v52 }
0x1389   : > { %2774 = vrot.lane.b32.xlu1 %v5212_v37, %s5471_s13  ;;  %s5474_s13 = smov 80  }
0x1405   : > { %v2693_v53 = vpop.xlane.xlu1 %2692 }
0x1406   : > { %4647 = vrcp.f32 %v2693_v53 }
0x1409   : > { %v2775_v56 = vpop.permute.xlu1 %2774 }
0x1410   : > { %v4648_v54 = vpop.eup %4647 }
0x1411   : > { %v2695_v55 = vmul.f32 %v4648_v54, %v4646_v51 }
0x1413   : > { %4344 = vmatmul.mubr.msk.f32.vlgmr.msra.gmra.mrb[22].mxu1 %vm1304_vm4, %v2695_v55 }
0x1414   : > { %4347 = vmatpush3.xpose.msk.msra.mxu1 %vm1304_vm4, %v2775_v56  ;;  %4348 = vmatprep.mubr.msk.f32.mxu1 %vm4766_vm0, %v4767_v4 }
0x1415   : > { %4351 = vmatprep.subr.mxu1 %v4767_v4 }
0x1417   : > { %4349 = vmatmul.mubr.msk.f32.vlgmr.msra.gmra.mrb[24].mxu1 %vm1304_vm4, %v2773_v57 }
0x1418   : > { %4353 = vmatprep.mubr.msk.f32.mxu1 %vm4766_vm0, %v4767_v4 }
0x14e6   : > { %v2768_v59 = vpop.f32.mrb[22].mxu1 }
0x14e7   : > { %v4345_v60 = vpop.f32.mrb[23].mxu1  ;;  %4364 = vmatmul.mubr.msk.f32.vlgmr.msra.gmra.mrb[14].mxu0 %vm1304_vm4, %v2768_v59 }
0x14e8   : > { %4373 = vmatprep.mubr.msk.f32.mxu0 %vm4766_vm0, %v4767_v4 }
0x14ea   : > { %v2846_v61 = vpop.f32.mrb[24].mxu1 }
0x14eb   : > { %v2850_v62 = vmul.f32 0.35355338, %v2846_v61  ;;  %v4350_v63 = vpop.f32.mrb[25].mxu1 }
0x14ed   : > { %v2851_v0 = vsel %vm5064_vm5, %v2850_v62, -1e+30 }
0x14ee   : > { %v2852_v1 = vsel %vm1304_vm4, %v2851_v0, -inf }
0x14ef   : > { %2853 = vmax.xlane.f32.xlu0 %v2852_v1 }
0x1505   : > { %2863 = vrot.lane.b32.xlu0 %v5212_v37, %s5472_s11  ;;  %s5475_s11 = smov 48  }
0x1509   : > { %3085 = vrot.lane.b32.xlu0 %v5212_v37, %s5473_s1  ;;  %s5476_s1 = smov 104  }
0x157c   : > { %v2854_v3 = vpop.xlane.xlu0 %2853 }
0x157d   : > { %v2855_v39 = vsub.f32 %v2851_v0, %v2854_v3 }
0x157f   : > { %v2856_v5 = vmul.f32 1.442695, %v2855_v39 }
0x1580   : > { %v2864_v6 = vpop.permute.xlu0 %2863 }
0x1581   : > { %4649 = vpow2.f32 %v2856_v5  ;;  %4352 = vmatpush3.msra.mxu1 %v2864_v6 }
0x1582   : > { %4356 = vmatprep.subr.mxu1 %v4767_v4 }
0x1584   : > { %v3086_v21 = vpop.permute.xlu0 %3085 }
0x158b   : > { %v4650_v7 = vpop.eup %4649 }
0x158c   : > { %v2858_v8 = vsel %vm1304_vm4, %v4650_v7, 0.0 }
0x158d   : > { %2859 = vadd.xlane.f32.xlu1 %v2858_v8 }
0x159e   : > { %3087 = vrot.lane.b32.xlu1 %v5212_v37, %s5474_s13  ;;  %s5477_s13 = smov 72  }
0x15ba   : > { %v3081_v9 = vpop.f32.mrb[14].mxu0 }
0x15bb   : > { %v4365_v10 = vpop.f32.mrb[15].mxu0 }
0x161a   : > { %v2860_v12 = vpop.xlane.xlu1 %2859 }
0x161b   : > { %4651 = vrcp.f32 %v2860_v12 }
0x161e   : > { %v3088_v19 = vpop.permute.xlu1 %3087 }
0x1625   : > { %v4652_v13 = vpop.eup %4651 }
0x1626   : > { %v2862_v16 = vmul.f32 %v4652_v13, %v4650_v7 }
0x1628   : > { %4354 = vmatmul.mubr.msk.f32.vlgmr.msra.gmra.mrb[26].mxu1 %vm1304_vm4, %v2862_v16 }
0x1629   : > { %4357 = vmatpush3.msra.mxu1 %v2472_v17  ;;  %4358 = vmatprep.mubr.msk.f32.mxu1 %vm4766_vm0, %v4767_v4 }
0x162a   : > { %4366 = vmatprep.subr.mxu1 %v4767_v4 }
0x16fb   : > { %v2935_v18 = vpop.f32.mrb[26].mxu1 }
0x16fc   : > { %v4355_v20 = vpop.f32.mrb[27].mxu1  ;;  %4359 = vmatmul.mubr.msk.f32.vlgmr.msra.gmra.mrb[28].mxu1 %vm1304_vm4, %v2935_v18 }
0x16fd   : > { %4367 = vmatpush3.xpose.msk.msra.mxu1 %vm1304_vm4, %v3088_v19  ;;  %4368 = vmatprep.mubr.msk.f32.mxu1 %vm4766_vm0, %v4767_v4 }
0x16fe   : > { %4376 = vmatprep.subr.mxu1 %v4767_v4 }
0x1700   : > { %4369 = vmatmul.mubr.msk.f32.vlgmr.msra.gmra.mrb[30].mxu1 %vm1304_vm4, %v3086_v21 }
0x1701   : > { %4378 = vmatprep.mubr.msk.f32.mxu1 %vm4766_vm0, %v4767_v4  ;;  %4377 = vmatpush3.msra.mxu1 %v2473_v41 }
0x1702   : > { %4386 = vmatprep.subr.mxu1 %v4767_v4 }
0x17cf   : > { %v3008_v15 = vpop.f32.mrb[28].mxu1 }
0x17d0   : > { %v3082_v22 = vadd.f32 %v3081_v9, %v3008_v15  ;;  %v4360_v11 = vpop.f32.mrb[29].mxu1 }
0x17d3   : > { %v3159_v23 = vpop.f32.mrb[30].mxu1 }
0x17d4   : > { %v3163_v24 = vmul.f32 0.35355338, %v3159_v23  ;;  %v4370_v25 = vpop.f32.mrb[31].mxu1 }
0x17d6   : > { %v3164_v26 = vsel %vm5064_vm5, %v3163_v24, -1e+30 }
0x17d7   : > { %v3165_v27 = vsel %vm1304_vm4, %v3164_v26, -inf }
0x17d8   : > { %3166 = vmax.xlane.f32.xlu0 %v3165_v27  ;;  %v4080_v27 = vld [vmem:[%s5483_s3] ss:$0 sm:$0xff]  ;;  %s5484_s3 = sld [smem:[#allocation23_spill]] }
0x17ee   : > { %3176 = vrot.lane.b32.xlu0 %v5212_v37, %s5475_s11  ;;  %s5478_s11 = smov 40  }
0x17f2   : > { %3326 = vrot.lane.b32.xlu0 %v5212_v37, %s5476_s1  ;;  %s5479_s1 = sld [smem:[#allocation19_spill]] }
0x17f8   : > { %v4078_v3 = vld [vmem:[%s5479_s1] ss:$0 sm:$0xff]  ;;  %s5482_s1 = sld [smem:[#allocation20_spill]] }
0x17fe   : > { %v4079_v25 = vld [vmem:[%s5482_s1] ss:$0 sm:$0xff]  ;;  %s5485_s1 = sld [smem:[#allocation25_spill]] }
0x1865   : > { %v3167_v28 = vpop.xlane.xlu0 %3166 }
0x1866   : > { %v3168_v29 = vsub.f32 %v3164_v26, %v3167_v28 }
0x1868   : > { %v3169_v30 = vmul.f32 1.442695, %v3168_v29 }
0x1869   : > { %v3177_v31 = vpop.permute.xlu0 %3176 }
0x186a   : > { %4653 = vpow2.f32 %v3169_v30  ;;  %4372 = vmatpush3.msra.mxu0 %v3177_v31 }
0x186b   : > { %4381 = vmatprep.subr.mxu0 %v4767_v4 }
0x186d   : > { %v3327_v40 = vpop.permute.xlu0 %3326 }
0x1874   : > { %v4654_v32 = vpop.eup %4653 }
0x1875   : > { %v3171_v33 = vsel %vm1304_vm4, %v4654_v32, 0.0 }
0x1876   : > { %3172 = vadd.xlane.f32.xlu1 %v3171_v33 }
0x1887   : > { %3328 = vrot.lane.b32.xlu1 %v5212_v37, %s5477_s13  ;;  %s5480_s13 = sld [smem:[#allocation22_spill]] }
0x188d   : > { %v2478_v13 = vld [vmem:[%s5480_s13] sm:$0xff]  ;;  %v2479_v16 = vld [vmem:[%s5480_s13 + $0x8] sm:$0xff]  ;;  %v2481_v18 = vld [vmem:[%s5480_s13 + $0x18] sm:$0xff] }
0x188e   : > { %v4499_v17 = vpack.c.bf16 %v2479_v16, %v2478_v13  ;;  %v3770_v16 = vld [vmem:[%s4943_s30] sm:$0xff] }
0x1903   : > { %v3173_v34 = vpop.xlane.xlu1 %3172 }
0x1904   : > { %4655 = vrcp.f32 %v3173_v34 }
0x1907   : > { %v3329_v38 = vpop.permute.xlu1 %3328 }
0x190e   : > { %v4656_v35 = vpop.eup %4655 }
0x190f   : > { %v3175_v36 = vmul.f32 %v4656_v35, %v4654_v32 }
0x1911   : > { %4374 = vmatmul.mubr.msk.f32.vlgmr.msra.gmra.mrb[16].mxu0 %vm1304_vm4, %v3175_v36 }
0x1912   : > { %4382 = vmatpush3.xpose.msk.msra.mxu0 %vm1304_vm4, %v3329_v38  ;;  %4383 = vmatprep.mubr.msk.f32.mxu0 %vm4766_vm0, %v4767_v4 }
0x1913   : > { %4391 = vmatprep.subr.mxu0 %v4767_v4 }
0x1915   : > { %4384 = vmatmul.mubr.msk.f32.vlgmr.msra.gmra.mrb[18].mxu0 %vm1304_vm4, %v3327_v40 }
0x1916   : > { %4393 = vmatprep.mubr.msk.f32.mxu0 %vm4766_vm0, %v4767_v4  ;;  %4392 = vmatpush3.msra.mxu0 %v2474_v48 }
0x1917   : > { %4504 = vmatprep.subr.bf16.mxu0 %v4765_v2 }
0x19e4   : > { %v3248_v42 = vpop.f32.mrb[16].mxu0 }
0x19e5   : > { %v4375_v43 = vpop.f32.mrb[17].mxu0  ;;  %4379 = vmatmul.mubr.msk.f32.vlgmr.msra.gmra.mrb[32].mxu1 %vm1304_vm4, %v3248_v42 }
0x19e6   : > { %4388 = vmatprep.mubr.msk.f32.mxu1 %vm4766_vm0, %v4767_v4 }
0x19e8   : > { %v3400_v44 = vpop.f32.mrb[18].mxu0 }
0x19e9   : > { %v3404_v45 = vmul.f32 0.35355338, %v3400_v44  ;;  %v4385_v46 = vpop.f32.mrb[19].mxu0 }
0x19eb   : > { %v3405_v47 = vsel %vm5064_vm5, %v3404_v45, -1e+30 }
0x19ec   : > { %v3406_v49 = vsel %vm1304_vm4, %v3405_v47, -inf }
0x19ed   : > { %3407 = vmax.xlane.f32.xlu0 %v3406_v49 }
0x1a03   : > { %3417 = vrot.lane.b32.xlu0 %v5212_v37, %s5478_s11  ;;  %s5481_s11 = sld [smem:[#allocation24_spill]] }
0x1a09   : > { %v2483_v20 = vld [vmem:[%s5481_s11] sm:$0xff]  ;;  %v2484_v21 = vld [vmem:[%s5481_s11 + $0x8] sm:$0xff]  ;;  %v2485_v30 = vld [vmem:[%s5481_s11 + $0x10] sm:$0xff] }
0x1a0a   : > { %v4505_v15 = vpack.c.bf16 %v2484_v21, %v2483_v20  ;;  %v2486_v31 = vld [vmem:[%s5481_s11 + $0x18] sm:$0xff]  ;;  %v2487_v33 = vld [vmem:[%s5481_s11 + $0x20] sm:$0xff]  ;;  %v2488_v34 = vld [vmem:[%s5481_s11 + $0x28] sm:$0xff] }
0x1a0b   : > { %v4508_v32 = vpack.c.bf16 %v2486_v31, %v2485_v30  ;;  %v4511_v35 = vpack.c.bf16 %v2488_v34, %v2487_v33  ;;  %v2489_v36 = vld [vmem:[%s5481_s11 + $0x30] sm:$0xff]  ;;  %v2490_v38 = vld [vmem:[%s5481_s11 + $0x38] sm:$0xff]  ;;  %v2492_v41 = vld [vmem:[%s5481_s11 + $0x48] sm:$0xff] }
0x1a0c   : > { %v4514_v40 = vpack.c.bf16 %v2490_v38, %v2489_v36  ;;  %v2493_v43 = vld [vmem:[%s5481_s11 + $0x50] sm:$0xff]  ;;  %v2494_v44 = vld [vmem:[%s5481_s11 + $0x58] sm:$0xff]  ;;  %v2495_v46 = vld [vmem:[%s5481_s11 + $0x60] sm:$0xff] }
0x1a0d   : > { %v4520_v45 = vpack.c.bf16 %v2494_v44, %v2493_v43 }
0x1a7a   : > { %v3408_v50 = vpop.xlane.xlu0 %3407 }
0x1a7b   : > { %v3409_v51 = vsub.f32 %v3405_v47, %v3408_v50  ;;  %v2496_v47 = vld [vmem:[%s5481_s11 + $0x68] sm:$0xff]  ;;  %v2497_v50 = vld [vmem:[%s5481_s11 + $0x70] sm:$0xff] }
0x1a7c   : > { %v4523_v49 = vpack.c.bf16 %v2496_v47, %v2495_v46 }
0x1a7d   : > { %v3410_v52 = vmul.f32 1.442695, %v3409_v51  ;;  %v2498_v51 = vld [vmem:[%s5481_s11 + $0x78] sm:$0xff] }
0x1a7e   : > { %v3418_v53 = vpop.permute.xlu0 %3417 }
0x1a7f   : > { %4657 = vpow2.f32 %v3410_v52  ;;  %4387 = vmatpush3.msra.mxu1 %v3418_v53  ;;  %v4526_v52 = vpack.c.bf16 %v2498_v51, %v2497_v50  ;;  %v4081_v53 = vld [vmem:[%s5484_s3] ss:$0 sm:$0xff]  ;;  %s5486_s3 = sld [smem:[#allocation26_spill]] }
0x1a80   : > { %4498 = vmatprep.subr.bf16.mxu1 %v4765_v2 }
0x1a89   : > { %v4658_v54 = vpop.eup %4657 }
0x1a8a   : > { %v3412_v55 = vsel %vm1304_vm4, %v4658_v54, 0.0 }
0x1a8b   : > { %3413 = vadd.xlane.f32.xlu1 %v3412_v55 }
0x1ab8   : > { %v3321_v56 = vpop.f32.mrb[32].mxu1 }
0x1ab9   : > { %v3325_v57 = vadd.f32 %v3321_v56, %v3082_v22  ;;  %v4380_v37 = vpop.f32.mrb[33].mxu1 }
0x1b18   : > { %v3414_v58 = vpop.xlane.xlu1 %3413 }
0x1b19   : > { %4659 = vrcp.f32 %v3414_v58 }
0x1b23   : > { %v4660_v59 = vpop.eup %4659 }
0x1b24   : > { %v3416_v60 = vmul.f32 %v4660_v59, %v4658_v54 }
0x1b26   : > { %4389 = vmatmul.mubr.msk.f32.vlgmr.msra.gmra.mrb[34].mxu1 %vm1304_vm4, %v3416_v60 }
0x1b27   : > { %4404 = vmatprep.mubr.msk.f32.mxu1 %vm4766_vm0, %v4767_v4  ;;  %4500 = vmatpush3.bf16.msra.mxu1 %v4499_v17  ;;  %v3771_v17 = vld [vmem:[%s4943_s30 + $0x8] sm:$0xff] }
0x1b28   : > { %4501 = vmatprep.subr.bf16.mxu1 %v4765_v2 }
0x1bf9   : > { %v3489_v61 = vpop.f32.mrb[34].mxu1 }
0x1bfa   : > { %v4390_v62 = vpop.f32.mrb[35].mxu1  ;;  %4394 = vmatmul.mubr.msk.f32.vlgmr.msra.gmra.mrb[20].mxu0 %vm1304_vm4, %v3489_v61 }
0x1bfb   : > { %4439 = vmatprep.mubr.msk.f32.mxu0 %vm4766_vm0, %v4767_v4  ;;  %4506 = vmatpush3.bf16.msra.mxu0 %v4505_v15 }
0x1bfc   : > { %4507 = vmatprep.subr.bf16.mxu0 %v4765_v2 }
0x1bff   : > { %4509 = vmatpush3.bf16.msra.mxu0 %v4508_v32 }
0x1c00   : > { %4510 = vmatprep.subr.bf16.mxu0 %v4765_v2 }
0x1c03   : > { %4512 = vmatpush3.bf16.msra.mxu0 %v4511_v35 }
0x1c04   : > { %4513 = vmatprep.subr.bf16.mxu0 %v4765_v2 }
0x1c07   : > { %4515 = vmatpush3.bf16.msra.mxu0 %v4514_v40 }
0x1c08   : > { %4516 = vmatprep.subr.bf16.mxu0 %v4765_v2 }
0x1ccd   : > { %v3562_v63 = vpop.f32.mrb[20].mxu0 }
0x1cce   : > { %v3566_v0 = vadd.f32 %v3562_v63, %v3325_v57  ;;  %v4395_v1 = vpop.f32.mrb[21].mxu0 }
0x1ccf   : > { %v4083_v1 = vld [vmem:[%s5485_s1] ss:$0 sm:$0xff]  ;;  %s1043_s1 = sand.u32 1, %s4721_s16  }
0x1cd0   : > { %v3567_v39 = vadd.f32 %v3566_v0, %v5194_v14  ;;  %v2480_v14 = vld [vmem:[%s5480_s13 + $0x10] sm:$0xff]  ;;  %s1044_s8 = scalar_lea.vmem [#allocation2], %s1043_s1  ;;  %s4673_s13 = scalar_lea.vmem %s4672_s12, 32 }
0x1cd1   : > { %v4502_v19 = vpack.c.bf16 %v2481_v18, %v2480_v14  ;;  %v4529_v14 = vpack.c.bf16 %v3771_v17, %v3770_v16  ;;  %v3773_v18 = vld [vmem:[%s4943_s30 + $0x18] sm:$0xff]  ;;  %s3900_s9 = sshll.u32 %s1044_s8, 4  ;;  %s5370_s9 = int_to_ptr.vmem [resolvable:$true] %s3900_s9 }
0x1cd2   : > { %v5311_v5 = vadd.f32 %v4078_v3, %v3567_v39  ;;  %p4674_p0 = scmp.lt.s32.totalorder %s5370_s9, %s4672_s12 }
0x1cd3   : > { %4503 = vmatpush3.bf16.msra.mxu1 %v4502_v19 }
0x1cd4   : > { %v3575_v6 = vsel %vm1150_vm3, %v5311_v5, 0.0  ;;  %4528 = vmatprep.subr.bf16.mxu1 %v4765_v2 }
0x1cd5   : > { %3576 = vadd.xlane.f32.xlu1 %v3575_v6 }
0x1d62   : > { %v3577_v7 = vpop.xlane.xlu1 %3576 }
0x1d63   : > { %v3578_v8 = vmul.f32 0.03125, %v3577_v7 }
0x1d65   : > { %v3579_v9 = vsub.f32 %v5311_v5, %v3578_v8 }
0x1d67   : > { %v3580_v10 = vmul.f32 %v3579_v9, %v3579_v9 }
0x1d69   : > { %v3581_v12 = vsel %vm1150_vm3, %v3580_v10, 0.0 }
0x1d6a   : > { %3582 = vadd.xlane.f32.xlu1 %v3581_v12 }
0x1df7   : > { %v3583_v22 = vpop.xlane.xlu1 %3582 }
0x1df8   : > { %v3584_v11 = vmul.f32 0.03125, %v3583_v22 }
0x1dfa   : > { %v3585_v23 = vadd.f32 1e-05, %v3584_v11  ;;  %v4084_v11 = vld [vmem:[%s5486_s3] ss:$0 sm:$0xff]  ;;  %s4667_s3 = scalar_lea.vmem %s5370_s9, 16 }
0x1dfb   : > { %p4668_p11 = scmp.ne.s32.totalorder %s5370_s9, %s4667_s3  ;;  %p4675_p1 = scmp.lt.s32.totalorder %s4673_s13, %s4667_s3 }
0x1dfc   : > { %4661 = vrsqrt.f32 %v3585_v23 }
0x1dfd   : > { %p4669_p12 = pnand %p4668_p11, %p4998_p5  ;;  %p4676_p2 = por %p4675_p1, %p4674_p0 }
0x1dff   : > { %p4670_p13 = pneg %p4669_p12 }
0x1e01   : > { %p4677_p3 = pnand %p4676_p2, %p4670_p13 }
0x1e06   : > { %v4662_v24 = vpop.eup %4661 }
0x1e07   : > { %v3587_v26 = vmul.f32 %v4662_v24, %v3579_v9  ;;  %v4085_v24 = vld [vmem:[%s5487_s5] ss:$0 sm:$0xff]  ;;  %s3884_s5 = scalar_lea.sflag [#allocation3], %s1043_s1 }
0x1e09   : > { %v3594_v28 = vmul.f32 %v4079_v25, %v3587_v26 }
0x1e0b   : > { %v3601_v29 = vadd.f32 %v4080_v27, %v3594_v28 }
0x1e0d   : > { %4405 = vmatmul.mubr.msk.f32.vlgmr.msra.gmra.mrb[36].mxu1 %vm1150_vm3, %v3601_v29 }
0x1e0e   : > { %4450 = vmatprep.mubr.msk.f32.mxu1 %vm4766_vm0, %v4767_v4  ;;  %v2491_v4 = vld [vmem:[%s5481_s11 + $0x40] sm:$0xff]  ;;  %4530 = vmatpush3.bf16.msra.mxu1 %v4529_v14  ;;  %s5368_s11 = scalar_lea.hbm %s4953_s4, %s4088_s6 }
0x1e0f   : > { %v4517_v42 = vpack.c.bf16 %v2492_v41, %v2491_v4  ;;  %4531 = vmatprep.subr.bf16.mxu1 %v4765_v2 }
0x1e11   : > { %4518 = vmatpush3.bf16.msra.mxu0 %v4517_v42 }
0x1e12   : > { %4519 = vmatprep.subr.bf16.mxu0 %v4765_v2 }
0x1e15   : > { %4521 = vmatpush3.bf16.msra.mxu0 %v4520_v45 }
0x1e16   : > { %4522 = vmatprep.subr.bf16.mxu0 %v4765_v2 }
0x1e19   : > { %4524 = vmatpush3.bf16.msra.mxu0 %v4523_v49 }
0x1e1a   : > { %4525 = vmatprep.subr.bf16.mxu0 %v4765_v2  ;;  %v4086_v2 = vld [vmem:[%s4948_s27] ss:$0 sm:$0xff] }
0x1e1d   : > { %4527 = vmatpush3.bf16.msra.mxu0 %v4526_v52 }
0x1ee0   : > { %v3677_v54 = vpop.f32.mrb[36].mxu1 }
0x1ee1   : > { %v3678_v55 = vadd.f32 %v4081_v53, %v3677_v54  ;;  %v4406_v48 = vpop.f32.mrb[37].mxu1 }
0x1ee3   : > { %v3682_v56 = vmul.f32 0.044715, %v3678_v55  ;;  %v3681_v61 = vmul.f32 0.5, %v3678_v55 }
0x1ee5   : > { %v3683_v57 = vmul.f32 %v3682_v56, %v3678_v55 }
0x1ee7   : > { %v3684_v37 = vmul.f32 %v3683_v57, %v3678_v55 }
0x1ee9   : > { %v3685_v58 = vadd.f32 %v3684_v37, %v3678_v55 }
0x1eeb   : > { %v3686_v59 = vmul.f32 0.7978846, %v3685_v58 }
0x1eed   : > { %4663 = vtanh.f32 %v3686_v59 }
0x1ef7   : > { %v4664_v60 = vpop.eup %4663 }
0x1ef8   : > { %v3688_v62 = vadd.f32 1.0, %v4664_v60 }
0x1efa   : > { %v3689_v63 = vmul.f32 %v3688_v62, %v3681_v61 }
0x1efc   : > { %4440 = vmatmul.mubr.f32.vlgmr.msra.gmra.mrb[22].mxu0 %v3689_v63 }
0x1fcf   : > { %v3756_v0 = vpop.f32.mrb[22].mxu0 }
0x1fd0   : > { %v3760_v3 = vadd.f32 %v3756_v0, %v5311_v5  ;;  %v4441_v39 = vpop.f32.mrb[23].mxu0  ;;  %v3772_v5 = vld [vmem:[%s4943_s30 + $0x10] sm:$0xff] }
0x1fd1   : > { %v4532_v19 = vpack.c.bf16 %v3773_v18, %v3772_v5 }
0x1fd2   : > { %v3767_v6 = vadd.f32 %v4083_v1, %v3760_v3 }
0x1fd3   : > { %4533 = vmatpush3.bf16.msra.mxu1 %v4532_v19 }
0x1fd4   : > { %v3775_v7 = vsel %vm1150_vm3, %v3767_v6, 0.0 }
0x1fd5   : > { %3776 = vadd.xlane.f32.xlu1 %v3775_v7 }
0x2062   : > { %v3777_v8 = vpop.xlane.xlu1 %3776 }
0x2063   : > { %v3778_v9 = vmul.f32 0.03125, %v3777_v8 }
0x2065   : > { %v3779_v10 = vsub.f32 %v3767_v6, %v3778_v9 }
0x2067   : > { %v3780_v12 = vmul.f32 %v3779_v10, %v3779_v10 }
0x2069   : > { %v3781_v13 = vsel %vm1150_vm3, %v3780_v12, 0.0 }
0x206a   : > { %3782 = vadd.xlane.f32.xlu1 %v3781_v13 }
0x20f7   : > { %v3783_v20 = vpop.xlane.xlu1 %3782 }
0x20f8   : > { %v3784_v21 = vmul.f32 0.03125, %v3783_v20 }
0x20fa   : > { %v3785_v15 = vadd.f32 1e-05, %v3784_v21 }
0x20fc   : > { %4665 = vrsqrt.f32 %v3785_v15 }
0x2106   : > { %v4666_v22 = vpop.eup %4665 }
0x2107   : > { %v3787_v23 = vmul.f32 %v4666_v22, %v3779_v10 }
0x2109   : > { %v3794_v25 = vmul.f32 %v4084_v11, %v3787_v23 }
0x210b   : > { %v3801_v26 = vadd.f32 %v4085_v24, %v3794_v25 }
0x210d   : > { %4451 = vmatmul.mubr.msk.f32.vlgmr.msra.gmra.mrb[38].mxu1 %vm1150_vm3, %v3801_v26 }
0x21e0   : > { %v3877_v27 = vpop.f32.mrb[38].mxu1 }
0x21e1   : > { %v3878_v28 = vadd.f32 %v4086_v2, %v3877_v27  ;;  %v4452_v29 = vpop.f32.mrb[39].mxu1 }
0x21e3   : > { %3882 = vst.msk [vmem:[%s1044_s8 - $0x7] sm:$0x80] %vm3881_vm6, %v3878_v28 }
0x21e4   : > { %4680 = shalt.err (!%p4677_p3)
}
0x21e5   : > { %s4681_s8 = scalar_lea.hbm %s5368_s11, 16  ;;  %s4685_s6 = scalar_lea.hbm %s4953_s4, 32 }
0x21e6   : > { %p4682_p4 = scmp.ne.s32.totalorder %s5368_s11, %s4681_s8  ;;  %p4686_p9 = scmp.lt.u32.totalorder %s5368_s11, %s4953_s4 }
0x21e7   : > { %p4687_p10 = scmp.lt.u32.totalorder %s4685_s6, %s4681_s8  ;;  %p4689_p12 = scmp.lt.u32.totalorder %s4681_s8, %s5368_s11 }
0x21e8   : > { %p4683_p7 = pnand %p4682_p4, %p4998_p5 }
0x21e9   : > { %p4688_p11 = por %p4687_p10, %p4686_p9 }
0x21ea   : > { %p4684_p8 = pneg %p4683_p7 }
0x21eb   : > { %p4690_p0 = por %p4689_p12, %p4688_p11 }
0x21ed   : > { %p4691_p13 = pnand %p4690_p0, %p4684_p8 }
0x21ef   : > { %4694 = shalt.err (!%p4691_p13)
}
0x21f0   : > { %4534 = dma.vmem_to_hbm [thread:$0]  (%p4998_p5), %s5370_s9, 16, %s5368_s11, %s3884_s5  }
0x21f1 PF: > { %p4540_p1 = scmp.ge.s32.totalorder %s4729_s22, 2  ;;  %s3915_s12 = sand.u32 1, %s4717_s15  }
0x21f2   : > { %s3916_s13 = scalar_lea.sflag [#allocation3], %s3915_s12 }
0x21f3   : > { %p4537_p2 = pnand %p4540_p1, %p5002_p6 }
0x21f5   : > { %4712 = dma.done.wait (!%p4537_p2), %s3916_s13, 16  }
0x21f6   : > { %4714 = vsyncadd (!%p4537_p2), %s3916_s13, 4294967280  ;;  %p80_p3 = scmp.ge.s32.totalorder %s4985_s26, 4   ;;  %s5488_s15 = smov %s4721_s16 }
0x21f7   : > { %s5489_s16 = smov %s4725_s18  ;;  %s5490_s18 = smov %s4996_s2 }
0x21f8   : > { %s5491_s22 = smov %s4985_s26  ;;  %82 = sbr.rel (!%p80_p3) target bundleno = 68 (0x44), region = 236 }
0x21ff   :  { %3927 = vsyncpa [#allocation3], 1 }
0x2200   :  { %3929 = vsyncpa [#allocation3 + $0x1], 1 }

</bundles_post_ra>
